<compile_context>
chip_gen: v6e
topology: v6e:2x2x1
jax: 0.10.0
libtpu: 0.0.40
codegen_flags: <defaults>
</compile_context>

<pallas_src>
import math
import jax
import jax.numpy as jnp
from jax.experimental import pallas as pl
from jax.experimental.pallas import tpu as pltpu


def make_fused_encoder_kernel(B, S, D, NH, FF):
    """One grid step == one TransformerEncoderLayer."""
    hd = D // NH
    BS = B * S
    scale = 1.0 / math.sqrt(hd)
    eps = 1e-5

    def layer_norm(y, w, b):
        mu = jnp.mean(y, axis=-1, keepdims=True)
        var = jnp.mean((y - mu) ** 2, axis=-1, keepdims=True)
        return (y - mu) * jax.lax.rsqrt(var + eps) * w + b

    def kernel(x_ref,
               wq_ref, wk_ref, wv_ref, bq_ref, bk_ref, bv_ref,
               wo_ref, bo_ref, ln1w_ref, ln1b_ref,
               w1_ref, b1_ref, w2_ref, b2_ref, ln2w_ref, ln2b_ref,
               out_ref):
        # Activation slab lives in the revisited output block: resident in VMEM
        # across all layers; only written back to HBM once at the end.
        @pl.when(pl.program_id(0) == 0)
        def _():
            out_ref[...] = x_ref[...]

        x = out_ref[...]                           # (B*S, D) f32, batch-major rows
        xb = x.astype(jnp.bfloat16)                # bf16 operands for the MXU

        # --- self attention --------------------------------------------------
        # Per-head projection weights were pre-split in the wrapper, so there is
        # no lane-dim slicing of a fused QKV result inside the kernel.
        q_heads, k_heads, v_heads = [], [], []
        for h in range(NH):
            qh = jnp.dot(xb, wq_ref[h], preferred_element_type=jnp.float32) + bq_ref[h]
            kh = jnp.dot(xb, wk_ref[h], preferred_element_type=jnp.float32) + bk_ref[h]
            vh = jnp.dot(xb, wv_ref[h], preferred_element_type=jnp.float32) + bv_ref[h]
            q_heads.append((qh * scale).reshape(B, S, hd))   # fold softmax scale into q
            k_heads.append(kh.reshape(B, S, hd))
            v_heads.append(vh.reshape(B, S, hd))

        # Head-batched operands (NH*B, S, hd) via leading-axis concat only.
        q_all = jnp.concatenate(q_heads, axis=0).astype(jnp.bfloat16)
        k_all = jnp.concatenate(k_heads, axis=0).astype(jnp.bfloat16)
        v_all = jnp.concatenate(v_heads, axis=0).astype(jnp.bfloat16)

        # One scores/softmax/context chain for all heads and batches.
        s = jnp.einsum('bqd,bkd->bqk', q_all, k_all,
                       preferred_element_type=jnp.float32)         # (NH*B, S, S)
        s = s - jnp.max(s, axis=-1, keepdims=True)
        e = jnp.exp(s)
        p = e * pl.reciprocal(jnp.sum(e, axis=-1, keepdims=True), approx=True)
        ctx = jnp.einsum('bqk,bkd->bqd', p.astype(jnp.bfloat16), v_all,
                         preferred_element_type=jnp.float32)        # (NH*B, S, hd)

        # Output projection with the head concat folded in: accumulate per-head
        # (hd, D) projections (== concat(heads) @ Wo^T) instead of a lane concat.
        attn = jnp.zeros((BS, D), jnp.float32)
        for h in range(NH):
            ctx_h = ctx[h * B:(h + 1) * B].reshape(BS, hd).astype(jnp.bfloat16)
            attn = attn + jnp.dot(ctx_h, wo_ref[h],
                                  preferred_element_type=jnp.float32)
        attn = attn + bo_ref[...]

        # TODO(synk): dropout layers are identity here (eval-mode semantics).

        # residual + LayerNorm1 (post-norm), f32
        y = layer_norm(x + attn, ln1w_ref[...], ln1b_ref[...])

        # feed-forward: linear1 -> relu -> linear2 (bf16 MXU, f32 accumulate)
        h1 = jnp.dot(y.astype(jnp.bfloat16), w1_ref[...],
                     preferred_element_type=jnp.float32) + b1_ref[...]
        h1 = jnp.maximum(h1, 0.0)
        ff = jnp.dot(h1.astype(jnp.bfloat16), w2_ref[...],
                     preferred_element_type=jnp.float32) + b2_ref[...]

        # residual + LayerNorm2; result stays resident for the next layer.
        out_ref[...] = layer_norm(y + ff, ln2w_ref[...], ln2b_ref[...])

    return kernel


_PARAM_ORDER = ("wq", "wk", "wv", "bq", "bk", "bv", "wo", "bo",
                "ln1w", "ln1b", "w1", "b1", "w2", "b2", "ln2w", "ln2b")
_BF16_PARAMS = frozenset({"wq", "wk", "wv", "wo", "w1", "w2"})


def init_layer_params(key, D, NH, FF):
    """Deterministic synthetic parameters for one encoder layer.

    Weights are stored pre-transposed / pre-split per head so the kernel never
    transposes or lane-slices: wq/wk/wv (NH, D, hd), wo (NH, hd, D),
    w1 (D, FF), w2 (FF, D).
    """
    hd = D // NH
    ks = jax.random.split(key, 12)
    std = 0.02
    return dict(
        wq=jax.random.normal(ks[0], (NH, D, hd), jnp.float32) * std,
        wk=jax.random.normal(ks[1], (NH, D, hd), jnp.float32) * std,
        wv=jax.random.normal(ks[2], (NH, D, hd), jnp.float32) * std,
        bq=jax.random.normal(ks[3], (NH, 1, hd), jnp.float32) * 0.01,
        bk=jax.random.normal(ks[4], (NH, 1, hd), jnp.float32) * 0.01,
        bv=jax.random.normal(ks[5], (NH, 1, hd), jnp.float32) * 0.01,
        wo=jax.random.normal(ks[6], (NH, hd, D), jnp.float32) * std,
        bo=jnp.zeros((1, D), jnp.float32),
        ln1w=jnp.ones((1, D), jnp.float32),
        ln1b=jnp.zeros((1, D), jnp.float32),
        w1=jax.random.normal(ks[7], (D, FF), jnp.float32) * std,
        b1=jax.random.normal(ks[8], (1, FF), jnp.float32) * 0.01,
        w2=jax.random.normal(ks[9], (FF, D), jnp.float32) * std,
        b2=jax.random.normal(ks[10], (1, D), jnp.float32) * 0.01,
        ln2w=jnp.ones((1, D), jnp.float32),
        ln2b=jnp.zeros((1, D), jnp.float32),
    )


def transformer_block(src, layer_params, num_heads, hidden_dim):
    """Applies all encoder layers with a single pallas_call, grid over layers.

    src: (S, B, D), batch_first=False like the PyTorch module.
    """
    S, B, D = src.shape
    L = len(layer_params)
    NH = num_heads
    hd = D // NH
    FF = hidden_dim
    BS = B * S

    # Stack per-layer parameters along a leading layer axis; matmul weights in
    # bf16 (MXU fast path, half the DMA bytes), biases / LN params stay f32.
    stacked = []
    for name in _PARAM_ORDER:
        arr = jnp.stack([p[name] for p in layer_params], axis=0)
        if name in _BF16_PARAMS:
            arr = arr.astype(jnp.bfloat16)
        stacked.append(arr)

    # Activation slab (batch-major rows); layout plumbing done outside the kernel.
    x2 = jnp.transpose(src, (1, 0, 2)).reshape(BS, D).astype(jnp.float32)

    def layer_spec(arr):
        nzeros = arr.ndim - 1
        return pl.BlockSpec((None,) + arr.shape[1:],
                            lambda l, _z=(0,) * nzeros: (l,) + _z)

    in_specs = [pl.BlockSpec((BS, D), lambda l: (0, 0))]
    in_specs += [layer_spec(a) for a in stacked]
    out_spec = pl.BlockSpec((BS, D), lambda l: (0, 0))   # revisited -> resident slab

    flops_layer = (2 * BS * D * D * 3            # q/k/v projections
                   + 4 * (NH * B) * S * S * hd   # scores + context
                   + 2 * BS * D * D              # output projection
                   + 4 * BS * D * FF)            # FFN
    cost = pl.CostEstimate(
        flops=int(L * flops_layer),
        transcendentals=int(L * NH * B * S * S),
        bytes_accessed=int(2 * x2.size * 4
                           + sum(a.size * a.dtype.itemsize for a in stacked)),
    )

    kernel = make_fused_encoder_kernel(B, S, D, NH, FF)
    out2 = pl.pallas_call(
        kernel,
        out_shape=jax.ShapeDtypeStruct((BS, D), jnp.float32),
        grid=(L,),
        in_specs=in_specs,
        out_specs=out_spec,
        input_output_aliases={0: 0},              # activation slab reused as output buffer
        cost_estimate=cost,
        compiler_params=pltpu.CompilerParams(
            dimension_semantics=("arbitrary",),   # layers are sequential
            vmem_limit_bytes=32 * 1024 * 1024,    # explicit; within v5e/v6e/v7x budgets
        ),
    )(x2, *stacked)

    return jnp.transpose(out2.reshape(B, S, D), (1, 0, 2))


if __name__ == "__main__":
    # Small shapes consistent with the module:
    #   input_size (d_model) = 32, num_heads = 4, num_layers = 2, hidden_dim = 64
    S, B, D = 8, 2, 32
    NUM_HEADS, NUM_LAYERS, HIDDEN = 4, 2, 64

    key = jax.random.PRNGKey(0)
    k_src, k_par = jax.random.split(key)
    src = jax.random.normal(k_src, (S, B, D), jnp.float32)

    layer_keys = jax.random.split(k_par, NUM_LAYERS)
    params = [init_layer_params(k, D, NUM_HEADS, HIDDEN) for k in layer_keys]

    out = transformer_block(src, params, NUM_HEADS, HIDDEN)
    out = jax.block_until_ready(out)
    assert out.shape == (S, B, D)
    assert bool(jnp.all(jnp.isfinite(out)))
    print("KERNEL_OK")
</pallas_src>

<mosaic_0001>
module attributes {stable_mosaic.version = 11 : i64} {
  func.func @kernel(%arg0: i32, %arg1: memref<16x32xf32, #tpu.memory_space<vmem>>, %arg2: memref<1x4x32x8xbf16, #tpu.memory_space<vmem>>, %arg3: memref<1x4x32x8xbf16, #tpu.memory_space<vmem>>, %arg4: memref<1x4x32x8xbf16, #tpu.memory_space<vmem>>, %arg5: memref<1x4x1x8xf32, #tpu.memory_space<vmem>>, %arg6: memref<1x4x1x8xf32, #tpu.memory_space<vmem>>, %arg7: memref<1x4x1x8xf32, #tpu.memory_space<vmem>>, %arg8: memref<1x4x8x32xbf16, #tpu.memory_space<vmem>>, %arg9: memref<1x1x32xf32, #tpu.memory_space<vmem>>, %arg10: memref<1x1x32xf32, #tpu.memory_space<vmem>>, %arg11: memref<1x1x32xf32, #tpu.memory_space<vmem>>, %arg12: memref<1x32x64xbf16, #tpu.memory_space<vmem>>, %arg13: memref<1x1x64xf32, #tpu.memory_space<vmem>>, %arg14: memref<1x64x32xbf16, #tpu.memory_space<vmem>>, %arg15: memref<1x1x32xf32, #tpu.memory_space<vmem>>, %arg16: memref<1x1x32xf32, #tpu.memory_space<vmem>>, %arg17: memref<1x1x32xf32, #tpu.memory_space<vmem>>, %arg18: memref<16x32xf32, #tpu.memory_space<vmem>>) attributes {dimension_semantics = [#tpu.dimension_semantics<arbitrary>], iteration_bounds = array<i64: 2>, scalar_prefetch = 0 : i64, scratch_operands = 0 : i64, tpu.core_type = #tpu.core_type<tc>, window_params = [{pipeline_mode = #tpu.pipeline_mode<synchronous>, transform_indices = @transform_0, window_bounds = array<i64: 16, 32>}, {transform_indices = @transform_1, window_bounds = array<i64: 1, 4, 32, 8>}, {transform_indices = @transform_2, window_bounds = array<i64: 1, 4, 32, 8>}, {transform_indices = @transform_3, window_bounds = array<i64: 1, 4, 32, 8>}, {transform_indices = @transform_4, window_bounds = array<i64: 1, 4, 1, 8>}, {transform_indices = @transform_5, window_bounds = array<i64: 1, 4, 1, 8>}, {transform_indices = @transform_6, window_bounds = array<i64: 1, 4, 1, 8>}, {transform_indices = @transform_7, window_bounds = array<i64: 1, 4, 8, 32>}, {transform_indices = @transform_8, window_bounds = array<i64: 1, 1, 32>}, {transform_indices = @transform_9, window_bounds = array<i64: 1, 1, 32>}, {transform_indices = @transform_10, window_bounds = array<i64: 1, 1, 32>}, {transform_indices = @transform_11, window_bounds = array<i64: 1, 32, 64>}, {transform_indices = @transform_12, window_bounds = array<i64: 1, 1, 64>}, {transform_indices = @transform_13, window_bounds = array<i64: 1, 64, 32>}, {transform_indices = @transform_14, window_bounds = array<i64: 1, 1, 32>}, {transform_indices = @transform_15, window_bounds = array<i64: 1, 1, 32>}, {transform_indices = @transform_16, window_bounds = array<i64: 1, 1, 32>}, {pipeline_mode = #tpu.pipeline_mode<synchronous>, transform_indices = @transform_17, window_bounds = array<i64: 16, 32>}]} {
    %c0_i32 = arith.constant 0 : i32
    %0 = arith.cmpi eq, %arg0, %c0_i32 : i32
    %1 = arith.extui %0 : i1 to i32
    %c0_i32_0 = arith.constant 0 : i32
    %2 = arith.cmpi ne, %1, %c0_i32_0 : i32
    scf.if %2 {
      %c0_177 = arith.constant 0 : index
      %c0_178 = arith.constant 0 : index
      %234 = vector.load %arg1[%c0_177, %c0_178] : memref<16x32xf32, #tpu.memory_space<vmem>>, vector<16x32xf32>
      %c0_179 = arith.constant 0 : index
      %c0_180 = arith.constant 0 : index
      %235 = vector.load %arg18[%c0_179, %c0_180] : memref<16x32xf32, #tpu.memory_space<vmem>>, vector<16x32xf32>
      tpu.vector_store %arg18[%c0_179, %c0_180], %234 {strides = array<i32>} : memref<16x32xf32, #tpu.memory_space<vmem>>, vector<16x32xf32>,
    } else {
    }
    %c0 = arith.constant 0 : index
    %c0_1 = arith.constant 0 : index
    %3 = vector.load %arg18[%c0, %c0_1] : memref<16x32xf32, #tpu.memory_space<vmem>>, vector<16x32xf32>
    %4 = arith.truncf %3 : vector<16x32xf32> to vector<16x32xbf16>
    %c0_2 = arith.constant 0 : index
    %c0_3 = arith.constant 0 : index
    %c0_4 = arith.constant 0 : index
    %c0_5 = arith.constant 0 : index
    %5 = vector.load %arg2[%c0_2, %c0_3, %c0_4, %c0_5] : memref<1x4x32x8xbf16, #tpu.memory_space<vmem>>, vector<1x1x32x8xbf16>
    %6 = vector.shape_cast %5 : vector<1x1x32x8xbf16> to vector<32x8xbf16>
    %cst = arith.constant dense<0.000000e+00> : vector<16x8xf32>
    %7 = tpu.matmul %4, %6, %cst {dimension_numbers = #tpu.dot_dimension_numbers<[1], [0], [0], [1], [0, 0, 1, 1], [], []>} : vector<16x32xbf16>, vector<32x8xbf16>, vector<16x8xf32> -> vector<16x8xf32>
    %c0_6 = arith.constant 0 : index
    %c0_7 = arith.constant 0 : index
    %c0_8 = arith.constant 0 : index
    %c0_9 = arith.constant 0 : index
    %8 = vector.load %arg5[%c0_6, %c0_7, %c0_8, %c0_9] : memref<1x4x1x8xf32, #tpu.memory_space<vmem>>, vector<1x1x1x8xf32>
    %9 = vector.shape_cast %8 : vector<1x1x1x8xf32> to vector<1x8xf32>
    %10 = vector.broadcast %9 : vector<1x8xf32> to vector<16x8xf32>
    %11 = arith.addf %7, %10 : vector<16x8xf32>
    %c0_10 = arith.constant 0 : index
    %c0_11 = arith.constant 0 : index
    %c0_12 = arith.constant 0 : index
    %c0_13 = arith.constant 0 : index
    %12 = vector.load %arg3[%c0_10, %c0_11, %c0_12, %c0_13] : memref<1x4x32x8xbf16, #tpu.memory_space<vmem>>, vector<1x1x32x8xbf16>
    %13 = vector.shape_cast %12 : vector<1x1x32x8xbf16> to vector<32x8xbf16>
    %cst_14 = arith.constant dense<0.000000e+00> : vector<16x8xf32>
    %14 = tpu.matmul %4, %13, %cst_14 {dimension_numbers = #tpu.dot_dimension_numbers<[1], [0], [0], [1], [0, 0, 1, 1], [], []>} : vector<16x32xbf16>, vector<32x8xbf16>, vector<16x8xf32> -> vector<16x8xf32>
    %c0_15 = arith.constant 0 : index
    %c0_16 = arith.constant 0 : index
    %c0_17 = arith.constant 0 : index
    %c0_18 = arith.constant 0 : index
    %15 = vector.load %arg6[%c0_15, %c0_16, %c0_17, %c0_18] : memref<1x4x1x8xf32, #tpu.memory_space<vmem>>, vector<1x1x1x8xf32>
    %16 = vector.shape_cast %15 : vector<1x1x1x8xf32> to vector<1x8xf32>
    %17 = vector.broadcast %16 : vector<1x8xf32> to vector<16x8xf32>
    %18 = arith.addf %14, %17 : vector<16x8xf32>
    %c0_19 = arith.constant 0 : index
    %c0_20 = arith.constant 0 : index
    %c0_21 = arith.constant 0 : index
    %c0_22 = arith.constant 0 : index
    %19 = vector.load %arg4[%c0_19, %c0_20, %c0_21, %c0_22] : memref<1x4x32x8xbf16, #tpu.memory_space<vmem>>, vector<1x1x32x8xbf16>
    %20 = vector.shape_cast %19 : vector<1x1x32x8xbf16> to vector<32x8xbf16>
    %cst_23 = arith.constant dense<0.000000e+00> : vector<16x8xf32>
    %21 = tpu.matmul %4, %20, %cst_23 {dimension_numbers = #tpu.dot_dimension_numbers<[1], [0], [0], [1], [0, 0, 1, 1], [], []>} : vector<16x32xbf16>, vector<32x8xbf16>, vector<16x8xf32> -> vector<16x8xf32>
    %c0_24 = arith.constant 0 : index
    %c0_25 = arith.constant 0 : index
    %c0_26 = arith.constant 0 : index
    %c0_27 = arith.constant 0 : index
    %22 = vector.load %arg7[%c0_24, %c0_25, %c0_26, %c0_27] : memref<1x4x1x8xf32, #tpu.memory_space<vmem>>, vector<1x1x1x8xf32>
    %23 = vector.shape_cast %22 : vector<1x1x1x8xf32> to vector<1x8xf32>
    %24 = vector.broadcast %23 : vector<1x8xf32> to vector<16x8xf32>
    %25 = arith.addf %21, %24 : vector<16x8xf32>
    %cst_28 = arith.constant 0.353553385 : f32
    %26 = vector.broadcast %cst_28 : f32 to vector<16x8xf32>
    %27 = arith.mulf %11, %26 : vector<16x8xf32>
    %28 = vector.shape_cast %27 : vector<16x8xf32> to vector<2x8x8xf32>
    %29 = vector.shape_cast %18 : vector<16x8xf32> to vector<2x8x8xf32>
    %30 = vector.shape_cast %25 : vector<16x8xf32> to vector<2x8x8xf32>
    %c0_29 = arith.constant 0 : index
    %c1 = arith.constant 1 : index
    %c0_30 = arith.constant 0 : index
    %c0_31 = arith.constant 0 : index
    %31 = vector.load %arg2[%c0_29, %c1, %c0_30, %c0_31] : memref<1x4x32x8xbf16, #tpu.memory_space<vmem>>, vector<1x1x32x8xbf16>
    %32 = vector.shape_cast %31 : vector<1x1x32x8xbf16> to vector<32x8xbf16>
    %cst_32 = arith.constant dense<0.000000e+00> : vector<16x8xf32>
    %33 = tpu.matmul %4, %32, %cst_32 {dimension_numbers = #tpu.dot_dimension_numbers<[1], [0], [0], [1], [0, 0, 1, 1], [], []>} : vector<16x32xbf16>, vector<32x8xbf16>, vector<16x8xf32> -> vector<16x8xf32>
    %c0_33 = arith.constant 0 : index
    %c1_34 = arith.constant 1 : index
    %c0_35 = arith.constant 0 : index
    %c0_36 = arith.constant 0 : index
    %34 = vector.load %arg5[%c0_33, %c1_34, %c0_35, %c0_36] : memref<1x4x1x8xf32, #tpu.memory_space<vmem>>, vector<1x1x1x8xf32>
    %35 = vector.shape_cast %34 : vector<1x1x1x8xf32> to vector<1x8xf32>
    %36 = vector.broadcast %35 : vector<1x8xf32> to vector<16x8xf32>
    %37 = arith.addf %33, %36 : vector<16x8xf32>
    %c0_37 = arith.constant 0 : index
    %c1_38 = arith.constant 1 : index
    %c0_39 = arith.constant 0 : index
    %c0_40 = arith.constant 0 : index
    %38 = vector.load %arg3[%c0_37, %c1_38, %c0_39, %c0_40] : memref<1x4x32x8xbf16, #tpu.memory_space<vmem>>, vector<1x1x32x8xbf16>
    %39 = vector.shape_cast %38 : vector<1x1x32x8xbf16> to vector<32x8xbf16>
    %cst_41 = arith.constant dense<0.000000e+00> : vector<16x8xf32>
    %40 = tpu.matmul %4, %39, %cst_41 {dimension_numbers = #tpu.dot_dimension_numbers<[1], [0], [0], [1], [0, 0, 1, 1], [], []>} : vector<16x32xbf16>, vector<32x8xbf16>, vector<16x8xf32> -> vector<16x8xf32>
    %c0_42 = arith.constant 0 : index
    %c1_43 = arith.constant 1 : index
    %c0_44 = arith.constant 0 : index
    %c0_45 = arith.constant 0 : index
    %41 = vector.load %arg6[%c0_42, %c1_43, %c0_44, %c0_45] : memref<1x4x1x8xf32, #tpu.memory_space<vmem>>, vector<1x1x1x8xf32>
    %42 = vector.shape_cast %41 : vector<1x1x1x8xf32> to vector<1x8xf32>
    %43 = vector.broadcast %42 : vector<1x8xf32> to vector<16x8xf32>
    %44 = arith.addf %40, %43 : vector<16x8xf32>
    %c0_46 = arith.constant 0 : index
    %c1_47 = arith.constant 1 : index
    %c0_48 = arith.constant 0 : index
    %c0_49 = arith.constant 0 : index
    %45 = vector.load %arg4[%c0_46, %c1_47, %c0_48, %c0_49] : memref<1x4x32x8xbf16, #tpu.memory_space<vmem>>, vector<1x1x32x8xbf16>
    %46 = vector.shape_cast %45 : vector<1x1x32x8xbf16> to vector<32x8xbf16>
    %cst_50 = arith.constant dense<0.000000e+00> : vector<16x8xf32>
    %47 = tpu.matmul %4, %46, %cst_50 {dimension_numbers = #tpu.dot_dimension_numbers<[1], [0], [0], [1], [0, 0, 1, 1], [], []>} : vector<16x32xbf16>, vector<32x8xbf16>, vector<16x8xf32> -> vector<16x8xf32>
    %c0_51 = arith.constant 0 : index
    %c1_52 = arith.constant 1 : index
    %c0_53 = arith.constant 0 : index
    %c0_54 = arith.constant 0 : index
    %48 = vector.load %arg7[%c0_51, %c1_52, %c0_53, %c0_54] : memref<1x4x1x8xf32, #tpu.memory_space<vmem>>, vector<1x1x1x8xf32>
    %49 = vector.shape_cast %48 : vector<1x1x1x8xf32> to vector<1x8xf32>
    %50 = vector.broadcast %49 : vector<1x8xf32> to vector<16x8xf32>
    %51 = arith.addf %47, %50 : vector<16x8xf32>
    %cst_55 = arith.constant 0.353553385 : f32
    %52 = vector.broadcast %cst_55 : f32 to vector<16x8xf32>
    %53 = arith.mulf %37, %52 : vector<16x8xf32>
    %54 = vector.shape_cast %53 : vector<16x8xf32> to vector<2x8x8xf32>
    %55 = vector.shape_cast %44 : vector<16x8xf32> to vector<2x8x8xf32>
    %56 = vector.shape_cast %51 : vector<16x8xf32> to vector<2x8x8xf32>
    %c0_56 = arith.constant 0 : index
    %c2 = arith.constant 2 : index
    %c0_57 = arith.constant 0 : index
    %c0_58 = arith.constant 0 : index
    %57 = vector.load %arg2[%c0_56, %c2, %c0_57, %c0_58] : memref<1x4x32x8xbf16, #tpu.memory_space<vmem>>, vector<1x1x32x8xbf16>
    %58 = vector.shape_cast %57 : vector<1x1x32x8xbf16> to vector<32x8xbf16>
    %cst_59 = arith.constant dense<0.000000e+00> : vector<16x8xf32>
    %59 = tpu.matmul %4, %58, %cst_59 {dimension_numbers = #tpu.dot_dimension_numbers<[1], [0], [0], [1], [0, 0, 1, 1], [], []>} : vector<16x32xbf16>, vector<32x8xbf16>, vector<16x8xf32> -> vector<16x8xf32>
    %c0_60 = arith.constant 0 : index
    %c2_61 = arith.constant 2 : index
    %c0_62 = arith.constant 0 : index
    %c0_63 = arith.constant 0 : index
    %60 = vector.load %arg5[%c0_60, %c2_61, %c0_62, %c0_63] : memref<1x4x1x8xf32, #tpu.memory_space<vmem>>, vector<1x1x1x8xf32>
    %61 = vector.shape_cast %60 : vector<1x1x1x8xf32> to vector<1x8xf32>
    %62 = vector.broadcast %61 : vector<1x8xf32> to vector<16x8xf32>
    %63 = arith.addf %59, %62 : vector<16x8xf32>
    %c0_64 = arith.constant 0 : index
    %c2_65 = arith.constant 2 : index
    %c0_66 = arith.constant 0 : index
    %c0_67 = arith.constant 0 : index
    %64 = vector.load %arg3[%c0_64, %c2_65, %c0_66, %c0_67] : memref<1x4x32x8xbf16, #tpu.memory_space<vmem>>, vector<1x1x32x8xbf16>
    %65 = vector.shape_cast %64 : vector<1x1x32x8xbf16> to vector<32x8xbf16>
    %cst_68 = arith.constant dense<0.000000e+00> : vector<16x8xf32>
    %66 = tpu.matmul %4, %65, %cst_68 {dimension_numbers = #tpu.dot_dimension_numbers<[1], [0], [0], [1], [0, 0, 1, 1], [], []>} : vector<16x32xbf16>, vector<32x8xbf16>, vector<16x8xf32> -> vector<16x8xf32>
    %c0_69 = arith.constant 0 : index
    %c2_70 = arith.constant 2 : index
    %c0_71 = arith.constant 0 : index
    %c0_72 = arith.constant 0 : index
    %67 = vector.load %arg6[%c0_69, %c2_70, %c0_71, %c0_72] : memref<1x4x1x8xf32, #tpu.memory_space<vmem>>, vector<1x1x1x8xf32>
    %68 = vector.shape_cast %67 : vector<1x1x1x8xf32> to vector<1x8xf32>
    %69 = vector.broadcast %68 : vector<1x8xf32> to vector<16x8xf32>
    %70 = arith.addf %66, %69 : vector<16x8xf32>
    %c0_73 = arith.constant 0 : index
    %c2_74 = arith.constant 2 : index
    %c0_75 = arith.constant 0 : index
    %c0_76 = arith.constant 0 : index
    %71 = vector.load %arg4[%c0_73, %c2_74, %c0_75, %c0_76] : memref<1x4x32x8xbf16, #tpu.memory_space<vmem>>, vector<1x1x32x8xbf16>
    %72 = vector.shape_cast %71 : vector<1x1x32x8xbf16> to vector<32x8xbf16>
    %cst_77 = arith.constant dense<0.000000e+00> : vector<16x8xf32>
    %73 = tpu.matmul %4, %72, %cst_77 {dimension_numbers = #tpu.dot_dimension_numbers<[1], [0], [0], [1], [0, 0, 1, 1], [], []>} : vector<16x32xbf16>, vector<32x8xbf16>, vector<16x8xf32> -> vector<16x8xf32>
    %c0_78 = arith.constant 0 : index
    %c2_79 = arith.constant 2 : index
    %c0_80 = arith.constant 0 : index
    %c0_81 = arith.constant 0 : index
    %74 = vector.load %arg7[%c0_78, %c2_79, %c0_80, %c0_81] : memref<1x4x1x8xf32, #tpu.memory_space<vmem>>, vector<1x1x1x8xf32>
    %75 = vector.shape_cast %74 : vector<1x1x1x8xf32> to vector<1x8xf32>
    %76 = vector.broadcast %75 : vector<1x8xf32> to vector<16x8xf32>
    %77 = arith.addf %73, %76 : vector<16x8xf32>
    %cst_82 = arith.constant 0.353553385 : f32
    %78 = vector.broadcast %cst_82 : f32 to vector<16x8xf32>
    %79 = arith.mulf %63, %78 : vector<16x8xf32>
    %80 = vector.shape_cast %79 : vector<16x8xf32> to vector<2x8x8xf32>
    %81 = vector.shape_cast %70 : vector<16x8xf32> to vector<2x8x8xf32>
    %82 = vector.shape_cast %77 : vector<16x8xf32> to vector<2x8x8xf32>
    %c0_83 = arith.constant 0 : index
    %c3 = arith.constant 3 : index
    %c0_84 = arith.constant 0 : index
    %c0_85 = arith.constant 0 : index
    %83 = vector.load %arg2[%c0_83, %c3, %c0_84, %c0_85] : memref<1x4x32x8xbf16, #tpu.memory_space<vmem>>, vector<1x1x32x8xbf16>
    %84 = vector.shape_cast %83 : vector<1x1x32x8xbf16> to vector<32x8xbf16>
    %cst_86 = arith.constant dense<0.000000e+00> : vector<16x8xf32>
    %85 = tpu.matmul %4, %84, %cst_86 {dimension_numbers = #tpu.dot_dimension_numbers<[1], [0], [0], [1], [0, 0, 1, 1], [], []>} : vector<16x32xbf16>, vector<32x8xbf16>, vector<16x8xf32> -> vector<16x8xf32>
    %c0_87 = arith.constant 0 : index
    %c3_88 = arith.constant 3 : index
    %c0_89 = arith.constant 0 : index
    %c0_90 = arith.constant 0 : index
    %86 = vector.load %arg5[%c0_87, %c3_88, %c0_89, %c0_90] : memref<1x4x1x8xf32, #tpu.memory_space<vmem>>, vector<1x1x1x8xf32>
    %87 = vector.shape_cast %86 : vector<1x1x1x8xf32> to vector<1x8xf32>
    %88 = vector.broadcast %87 : vector<1x8xf32> to vector<16x8xf32>
    %89 = arith.addf %85, %88 : vector<16x8xf32>
    %c0_91 = arith.constant 0 : index
    %c3_92 = arith.constant 3 : index
    %c0_93 = arith.constant 0 : index
    %c0_94 = arith.constant 0 : index
    %90 = vector.load %arg3[%c0_91, %c3_92, %c0_93, %c0_94] : memref<1x4x32x8xbf16, #tpu.memory_space<vmem>>, vector<1x1x32x8xbf16>
    %91 = vector.shape_cast %90 : vector<1x1x32x8xbf16> to vector<32x8xbf16>
    %cst_95 = arith.constant dense<0.000000e+00> : vector<16x8xf32>
    %92 = tpu.matmul %4, %91, %cst_95 {dimension_numbers = #tpu.dot_dimension_numbers<[1], [0], [0], [1], [0, 0, 1, 1], [], []>} : vector<16x32xbf16>, vector<32x8xbf16>, vector<16x8xf32> -> vector<16x8xf32>
    %c0_96 = arith.constant 0 : index
    %c3_97 = arith.constant 3 : index
    %c0_98 = arith.constant 0 : index
    %c0_99 = arith.constant 0 : index
    %93 = vector.load %arg6[%c0_96, %c3_97, %c0_98, %c0_99] : memref<1x4x1x8xf32, #tpu.memory_space<vmem>>, vector<1x1x1x8xf32>
    %94 = vector.shape_cast %93 : vector<1x1x1x8xf32> to vector<1x8xf32>
    %95 = vector.broadcast %94 : vector<1x8xf32> to vector<16x8xf32>
    %96 = arith.addf %92, %95 : vector<16x8xf32>
    %c0_100 = arith.constant 0 : index
    %c3_101 = arith.constant 3 : index
    %c0_102 = arith.constant 0 : index
    %c0_103 = arith.constant 0 : index
    %97 = vector.load %arg4[%c0_100, %c3_101, %c0_102, %c0_103] : memref<1x4x32x8xbf16, #tpu.memory_space<vmem>>, vector<1x1x32x8xbf16>
    %98 = vector.shape_cast %97 : vector<1x1x32x8xbf16> to vector<32x8xbf16>
    %cst_104 = arith.constant dense<0.000000e+00> : vector<16x8xf32>
    %99 = tpu.matmul %4, %98, %cst_104 {dimension_numbers = #tpu.dot_dimension_numbers<[1], [0], [0], [1], [0, 0, 1, 1], [], []>} : vector<16x32xbf16>, vector<32x8xbf16>, vector<16x8xf32> -> vector<16x8xf32>
    %c0_105 = arith.constant 0 : index
    %c3_106 = arith.constant 3 : index
    %c0_107 = arith.constant 0 : index
    %c0_108 = arith.constant 0 : index
    %100 = vector.load %arg7[%c0_105, %c3_106, %c0_107, %c0_108] : memref<1x4x1x8xf32, #tpu.memory_space<vmem>>, vector<1x1x1x8xf32>
    %101 = vector.shape_cast %100 : vector<1x1x1x8xf32> to vector<1x8xf32>
    %102 = vector.broadcast %101 : vector<1x8xf32> to vector<16x8xf32>
    %103 = arith.addf %99, %102 : vector<16x8xf32>
    %cst_109 = arith.constant 0.353553385 : f32
    %104 = vector.broadcast %cst_109 : f32 to vector<16x8xf32>
    %105 = arith.mulf %89, %104 : vector<16x8xf32>
    %106 = vector.shape_cast %105 : vector<16x8xf32> to vector<2x8x8xf32>
    %107 = vector.shape_cast %96 : vector<16x8xf32> to vector<2x8x8xf32>
    %108 = vector.shape_cast %103 : vector<16x8xf32> to vector<2x8x8xf32>
    %109 = tpu.concatenate %28, %54, %80, %106 in 0 : vector<2x8x8xf32>, vector<2x8x8xf32>, vector<2x8x8xf32>, vector<2x8x8xf32> -> vector<8x8x8xf32>
    %110 = arith.truncf %109 : vector<8x8x8xf32> to vector<8x8x8xbf16>
    %111 = tpu.concatenate %29, %55, %81, %107 in 0 : vector<2x8x8xf32>, vector<2x8x8xf32>, vector<2x8x8xf32>, vector<2x8x8xf32> -> vector<8x8x8xf32>
    %112 = arith.truncf %111 : vector<8x8x8xf32> to vector<8x8x8xbf16>
    %113 = tpu.concatenate %30, %56, %82, %108 in 0 : vector<2x8x8xf32>, vector<2x8x8xf32>, vector<2x8x8xf32>, vector<2x8x8xf32> -> vector<8x8x8xf32>
    %114 = arith.truncf %113 : vector<8x8x8xf32> to vector<8x8x8xbf16>
    "tpu.trace_start"() <{level = 10 : i32, message = "bqd,bkd->bqk"}> : () -> ()
    %cst_110 = arith.constant dense<0.000000e+00> : vector<8x8x8xf32>
    %115 = tpu.matmul %110, %112, %cst_110 {dimension_numbers = #tpu.dot_dimension_numbers<[2], [2], [1], [1], [0, 0, 0, 1, 1, 1], [0], [0]>} : vector<8x8x8xbf16>, vector<8x8x8xbf16>, vector<8x8x8xf32> -> vector<8x8x8xf32>
    "tpu.trace_stop"() : () -> ()
    %cst_111 = arith.constant dense<0xFF800000> : vector<8x8xf32>
    %116 = vector.multi_reduction <maximumf>, %115, %cst_111 [2] : vector<8x8x8xf32> to vector<8x8xf32>
    %117 = vector.shape_cast %116 : vector<8x8xf32> to vector<8x8x1xf32>
    %118 = vector.broadcast %117 : vector<8x8x1xf32> to vector<8x8x8xf32>
    %119 = arith.subf %115, %118 : vector<8x8x8xf32>
    %120 = math.exp %119 : vector<8x8x8xf32>
    %cst_112 = arith.constant dense<0.000000e+00> : vector<8x8xf32>
    %121 = vector.multi_reduction <add>, %120, %cst_112 [2] : vector<8x8x8xf32> to vector<8x8xf32>
    %122 = vector.shape_cast %121 : vector<8x8xf32> to vector<8x8x1xf32>
    %123 = tpu.reciprocal %122 {approx = true} : vector<8x8x1xf32> -> vector<8x8x1xf32>
    %124 = vector.broadcast %123 : vector<8x8x1xf32> to vector<8x8x8xf32>
    %125 = arith.mulf %120, %124 : vector<8x8x8xf32>
    %126 = arith.truncf %125 : vector<8x8x8xf32> to vector<8x8x8xbf16>
    "tpu.trace_start"() <{level = 10 : i32, message = "bqk,bkd->bqd"}> : () -> ()
    %cst_113 = arith.constant dense<0.000000e+00> : vector<8x8x8xf32>
    %127 = tpu.matmul %126, %114, %cst_113 {dimension_numbers = #tpu.dot_dimension_numbers<[2], [1], [1], [2], [0, 0, 0, 1, 1, 2], [0], [0]>} : vector<8x8x8xbf16>, vector<8x8x8xbf16>, vector<8x8x8xf32> -> vector<8x8x8xf32>
    %cst_114 = arith.constant 0.000000e+00 : f32
    "tpu.trace_stop"() : () -> ()
    %128 = vector.broadcast %cst_114 : f32 to vector<16x32xf32>
    %129 = vector.extract_strided_slice %127 {offsets = [0, 0, 0], sizes = [2, 8, 8], strides = [1, 1, 1]} : vector<8x8x8xf32> to vector<2x8x8xf32>
    %130 = vector.shape_cast %129 : vector<2x8x8xf32> to vector<16x8xf32>
    %131 = arith.truncf %130 : vector<16x8xf32> to vector<16x8xbf16>
    %c0_115 = arith.constant 0 : index
    %c0_116 = arith.constant 0 : index
    %c0_117 = arith.constant 0 : index
    %c0_118 = arith.constant 0 : index
    %132 = vector.load %arg8[%c0_115, %c0_116, %c0_117, %c0_118] : memref<1x4x8x32xbf16, #tpu.memory_space<vmem>>, vector<1x1x8x32xbf16>
    %133 = vector.shape_cast %132 : vector<1x1x8x32xbf16> to vector<8x32xbf16>
    %cst_119 = arith.constant dense<0.000000e+00> : vector<16x32xf32>
    %134 = tpu.matmul %131, %133, %cst_119 {dimension_numbers = #tpu.dot_dimension_numbers<[1], [0], [0], [1], [0, 0, 1, 1], [], []>} : vector<16x8xbf16>, vector<8x32xbf16>, vector<16x32xf32> -> vector<16x32xf32>
    %135 = arith.addf %128, %134 : vector<16x32xf32>
    %136 = vector.extract_strided_slice %127 {offsets = [2, 0, 0], sizes = [2, 8, 8], strides = [1, 1, 1]} : vector<8x8x8xf32> to vector<2x8x8xf32>
    %137 = vector.shape_cast %136 : vector<2x8x8xf32> to vector<16x8xf32>
    %138 = arith.truncf %137 : vector<16x8xf32> to vector<16x8xbf16>
    %c0_120 = arith.constant 0 : index
    %c1_121 = arith.constant 1 : index
    %c0_122 = arith.constant 0 : index
    %c0_123 = arith.constant 0 : index
    %139 = vector.load %arg8[%c0_120, %c1_121, %c0_122, %c0_123] : memref<1x4x8x32xbf16, #tpu.memory_space<vmem>>, vector<1x1x8x32xbf16>
    %140 = vector.shape_cast %139 : vector<1x1x8x32xbf16> to vector<8x32xbf16>
    %cst_124 = arith.constant dense<0.000000e+00> : vector<16x32xf32>
    %141 = tpu.matmul %138, %140, %cst_124 {dimension_numbers = #tpu.dot_dimension_numbers<[1], [0], [0], [1], [0, 0, 1, 1], [], []>} : vector<16x8xbf16>, vector<8x32xbf16>, vector<16x32xf32> -> vector<16x32xf32>
    %142 = arith.addf %135, %141 : vector<16x32xf32>
    %143 = vector.extract_strided_slice %127 {offsets = [4, 0, 0], sizes = [2, 8, 8], strides = [1, 1, 1]} : vector<8x8x8xf32> to vector<2x8x8xf32>
    %144 = vector.shape_cast %143 : vector<2x8x8xf32> to vector<16x8xf32>
    %145 = arith.truncf %144 : vector<16x8xf32> to vector<16x8xbf16>
    %c0_125 = arith.constant 0 : index
    %c2_126 = arith.constant 2 : index
    %c0_127 = arith.constant 0 : index
    %c0_128 = arith.constant 0 : index
    %146 = vector.load %arg8[%c0_125, %c2_126, %c0_127, %c0_128] : memref<1x4x8x32xbf16, #tpu.memory_space<vmem>>, vector<1x1x8x32xbf16>
    %147 = vector.shape_cast %146 : vector<1x1x8x32xbf16> to vector<8x32xbf16>
    %cst_129 = arith.constant dense<0.000000e+00> : vector<16x32xf32>
    %148 = tpu.matmul %145, %147, %cst_129 {dimension_numbers = #tpu.dot_dimension_numbers<[1], [0], [0], [1], [0, 0, 1, 1], [], []>} : vector<16x8xbf16>, vector<8x32xbf16>, vector<16x32xf32> -> vector<16x32xf32>
    %149 = arith.addf %142, %148 : vector<16x32xf32>
    %150 = vector.extract_strided_slice %127 {offsets = [6, 0, 0], sizes = [2, 8, 8], strides = [1, 1, 1]} : vector<8x8x8xf32> to vector<2x8x8xf32>
    %151 = vector.shape_cast %150 : vector<2x8x8xf32> to vector<16x8xf32>
    %152 = arith.truncf %151 : vector<16x8xf32> to vector<16x8xbf16>
    %c0_130 = arith.constant 0 : index
    %c3_131 = arith.constant 3 : index
    %c0_132 = arith.constant 0 : index
    %c0_133 = arith.constant 0 : index
    %153 = vector.load %arg8[%c0_130, %c3_131, %c0_132, %c0_133] : memref<1x4x8x32xbf16, #tpu.memory_space<vmem>>, vector<1x1x8x32xbf16>
    %154 = vector.shape_cast %153 : vector<1x1x8x32xbf16> to vector<8x32xbf16>
    %cst_134 = arith.constant dense<0.000000e+00> : vector<16x32xf32>
    %155 = tpu.matmul %152, %154, %cst_134 {dimension_numbers = #tpu.dot_dimension_numbers<[1], [0], [0], [1], [0, 0, 1, 1], [], []>} : vector<16x8xbf16>, vector<8x32xbf16>, vector<16x32xf32> -> vector<16x32xf32>
    %156 = arith.addf %149, %155 : vector<16x32xf32>
    %c0_135 = arith.constant 0 : index
    %c0_136 = arith.constant 0 : index
    %c0_137 = arith.constant 0 : index
    %157 = vector.load %arg9[%c0_135, %c0_136, %c0_137] : memref<1x1x32xf32, #tpu.memory_space<vmem>>, vector<1x1x32xf32>
    %158 = vector.shape_cast %157 : vector<1x1x32xf32> to vector<1x32xf32>
    %159 = vector.broadcast %158 : vector<1x32xf32> to vector<16x32xf32>
    %160 = arith.addf %156, %159 : vector<16x32xf32>
    %161 = arith.addf %3, %160 : vector<16x32xf32>
    %c0_138 = arith.constant 0 : index
    %c0_139 = arith.constant 0 : index
    %c0_140 = arith.constant 0 : index
    %162 = vector.load %arg10[%c0_138, %c0_139, %c0_140] : memref<1x1x32xf32, #tpu.memory_space<vmem>>, vector<1x1x32xf32>
    %163 = vector.shape_cast %162 : vector<1x1x32xf32> to vector<1x32xf32>
    %c0_141 = arith.constant 0 : index
    %c0_142 = arith.constant 0 : index
    %c0_143 = arith.constant 0 : index
    %164 = vector.load %arg11[%c0_141, %c0_142, %c0_143] : memref<1x1x32xf32, #tpu.memory_space<vmem>>, vector<1x1x32xf32>
    %165 = vector.shape_cast %164 : vector<1x1x32xf32> to vector<1x32xf32>
    %cst_144 = arith.constant dense<0.000000e+00> : vector<16xf32>
    %166 = vector.multi_reduction <add>, %161, %cst_144 [1] : vector<16x32xf32> to vector<16xf32>
    %167 = vector.shape_cast %166 : vector<16xf32> to vector<16x1xf32>
    %cst_145 = arith.constant 3.200000e+01 : f32
    %168 = vector.broadcast %cst_145 : f32 to vector<16x1xf32>
    %169 = arith.divf %167, %168 : vector<16x1xf32>
    %170 = vector.broadcast %169 : vector<16x1xf32> to vector<16x32xf32>
    %171 = arith.subf %161, %170 : vector<16x32xf32>
    %172 = arith.mulf %171, %171 : vector<16x32xf32>
    %cst_146 = arith.constant dense<0.000000e+00> : vector<16xf32>
    %173 = vector.multi_reduction <add>, %172, %cst_146 [1] : vector<16x32xf32> to vector<16xf32>
    %174 = vector.shape_cast %173 : vector<16xf32> to vector<16x1xf32>
    %cst_147 = arith.constant 3.200000e+01 : f32
    %175 = vector.broadcast %cst_147 : f32 to vector<16x1xf32>
    %176 = arith.divf %174, %175 : vector<16x1xf32>
    %177 = vector.broadcast %169 : vector<16x1xf32> to vector<16x32xf32>
    %178 = arith.subf %161, %177 : vector<16x32xf32>
    %cst_148 = arith.constant 9.99999974E-6 : f32
    %179 = vector.broadcast %cst_148 : f32 to vector<16x1xf32>
    %180 = arith.addf %176, %179 : vector<16x1xf32>
    %181 = math.rsqrt %180 : vector<16x1xf32>
    %182 = vector.broadcast %181 : vector<16x1xf32> to vector<16x32xf32>
    %183 = arith.mulf %178, %182 : vector<16x32xf32>
    %184 = vector.broadcast %163 : vector<1x32xf32> to vector<16x32xf32>
    %185 = arith.mulf %183, %184 : vector<16x32xf32>
    %186 = vector.broadcast %165 : vector<1x32xf32> to vector<16x32xf32>
    %187 = arith.addf %185, %186 : vector<16x32xf32>
    %188 = arith.truncf %187 : vector<16x32xf32> to vector<16x32xbf16>
    %c0_149 = arith.constant 0 : index
    %c0_150 = arith.constant 0 : index
    %c0_151 = arith.constant 0 : index
    %189 = vector.load %arg12[%c0_149, %c0_150, %c0_151] : memref<1x32x64xbf16, #tpu.memory_space<vmem>>, vector<1x32x64xbf16>
    %190 = vector.shape_cast %189 : vector<1x32x64xbf16> to vector<32x64xbf16>
    %cst_152 = arith.constant dense<0.000000e+00> : vector<16x64xf32>
    %191 = tpu.matmul %188, %190, %cst_152 {dimension_numbers = #tpu.dot_dimension_numbers<[1], [0], [0], [1], [0, 0, 1, 1], [], []>} : vector<16x32xbf16>, vector<32x64xbf16>, vector<16x64xf32> -> vector<16x64xf32>
    %c0_153 = arith.constant 0 : index
    %c0_154 = arith.constant 0 : index
    %c0_155 = arith.constant 0 : index
    %192 = vector.load %arg13[%c0_153, %c0_154, %c0_155] : memref<1x1x64xf32, #tpu.memory_space<vmem>>, vector<1x1x64xf32>
    %193 = vector.shape_cast %192 : vector<1x1x64xf32> to vector<1x64xf32>
    %194 = vector.broadcast %193 : vector<1x64xf32> to vector<16x64xf32>
    %195 = arith.addf %191, %194 : vector<16x64xf32>
    %cst_156 = arith.constant 0.000000e+00 : f32
    %196 = vector.broadcast %cst_156 : f32 to vector<16x64xf32>
    %197 = arith.maximumf %195, %196 : vector<16x64xf32>
    %198 = arith.truncf %197 : vector<16x64xf32> to vector<16x64xbf16>
    %c0_157 = arith.constant 0 : index
    %c0_158 = arith.constant 0 : index
    %c0_159 = arith.constant 0 : index
    %199 = vector.load %arg14[%c0_157, %c0_158, %c0_159] : memref<1x64x32xbf16, #tpu.memory_space<vmem>>, vector<1x64x32xbf16>
    %200 = vector.shape_cast %199 : vector<1x64x32xbf16> to vector<64x32xbf16>
    %cst_160 = arith.constant dense<0.000000e+00> : vector<16x32xf32>
    %201 = tpu.matmul %198, %200, %cst_160 {dimension_numbers = #tpu.dot_dimension_numbers<[1], [0], [0], [1], [0, 0, 1, 1], [], []>} : vector<16x64xbf16>, vector<64x32xbf16>, vector<16x32xf32> -> vector<16x32xf32>
    %c0_161 = arith.constant 0 : index
    %c0_162 = arith.constant 0 : index
    %c0_163 = arith.constant 0 : index
    %202 = vector.load %arg15[%c0_161, %c0_162, %c0_163] : memref<1x1x32xf32, #tpu.memory_space<vmem>>, vector<1x1x32xf32>
    %203 = vector.shape_cast %202 : vector<1x1x32xf32> to vector<1x32xf32>
    %204 = vector.broadcast %203 : vector<1x32xf32> to vector<16x32xf32>
    %205 = arith.addf %201, %204 : vector<16x32xf32>
    %206 = arith.addf %187, %205 : vector<16x32xf32>
    %c0_164 = arith.constant 0 : index
    %c0_165 = arith.constant 0 : index
    %c0_166 = arith.constant 0 : index
    %207 = vector.load %arg16[%c0_164, %c0_165, %c0_166] : memref<1x1x32xf32, #tpu.memory_space<vmem>>, vector<1x1x32xf32>
    %208 = vector.shape_cast %207 : vector<1x1x32xf32> to vector<1x32xf32>
    %c0_167 = arith.constant 0 : index
    %c0_168 = arith.constant 0 : index
    %c0_169 = arith.constant 0 : index
    %209 = vector.load %arg17[%c0_167, %c0_168, %c0_169] : memref<1x1x32xf32, #tpu.memory_space<vmem>>, vector<1x1x32xf32>
    %210 = vector.shape_cast %209 : vector<1x1x32xf32> to vector<1x32xf32>
    %cst_170 = arith.constant dense<0.000000e+00> : vector<16xf32>
    %211 = vector.multi_reduction <add>, %206, %cst_170 [1] : vector<16x32xf32> to vector<16xf32>
    %212 = vector.shape_cast %211 : vector<16xf32> to vector<16x1xf32>
    %cst_171 = arith.constant 3.200000e+01 : f32
    %213 = vector.broadcast %cst_171 : f32 to vector<16x1xf32>
    %214 = arith.divf %212, %213 : vector<16x1xf32>
    %215 = vector.broadcast %214 : vector<16x1xf32> to vector<16x32xf32>
    %216 = arith.subf %206, %215 : vector<16x32xf32>
    %217 = arith.mulf %216, %216 : vector<16x32xf32>
    %cst_172 = arith.constant dense<0.000000e+00> : vector<16xf32>
    %218 = vector.multi_reduction <add>, %217, %cst_172 [1] : vector<16x32xf32> to vector<16xf32>
    %219 = vector.shape_cast %218 : vector<16xf32> to vector<16x1xf32>
    %cst_173 = arith.constant 3.200000e+01 : f32
    %220 = vector.broadcast %cst_173 : f32 to vector<16x1xf32>
    %221 = arith.divf %219, %220 : vector<16x1xf32>
    %222 = vector.broadcast %214 : vector<16x1xf32> to vector<16x32xf32>
    %223 = arith.subf %206, %222 : vector<16x32xf32>
    %cst_174 = arith.constant 9.99999974E-6 : f32
    %224 = vector.broadcast %cst_174 : f32 to vector<16x1xf32>
    %225 = arith.addf %221, %224 : vector<16x1xf32>
    %226 = math.rsqrt %225 : vector<16x1xf32>
    %227 = vector.broadcast %226 : vector<16x1xf32> to vector<16x32xf32>
    %228 = arith.mulf %223, %227 : vector<16x32xf32>
    %229 = vector.broadcast %208 : vector<1x32xf32> to vector<16x32xf32>
    %230 = arith.mulf %228, %229 : vector<16x32xf32>
    %231 = vector.broadcast %210 : vector<1x32xf32> to vector<16x32xf32>
    %232 = arith.addf %230, %231 : vector<16x32xf32>
    %c0_175 = arith.constant 0 : index
    %c0_176 = arith.constant 0 : index
    %233 = vector.load %arg18[%c0_175, %c0_176] : memref<16x32xf32, #tpu.memory_space<vmem>>, vector<16x32xf32>
    tpu.vector_store %arg18[%c0_175, %c0_176], %232 {strides = array<i32>} : memref<16x32xf32, #tpu.memory_space<vmem>>, vector<16x32xf32>,
    return
  }
  func.func @transform_0(%arg0: i32) -> (i32, i32) {
    %c0_i32 = arith.constant 0 : i32
    %c0_i32_0 = arith.constant 0 : i32
    %c0_i32_1 = arith.constant 0 : i32
    return %c0_i32, %c0_i32_0 : i32, i32
  }
  func.func @transform_1(%arg0: i32) -> (i32, i32, i32, i32) {
    %c0_i32 = arith.constant 0 : i32
    %c0_i32_0 = arith.constant 0 : i32
    %c0_i32_1 = arith.constant 0 : i32
    %c0_i32_2 = arith.constant 0 : i32
    return %arg0, %c0_i32, %c0_i32_0, %c0_i32_1 : i32, i32, i32, i32
  }
  func.func @transform_2(%arg0: i32) -> (i32, i32, i32, i32) {
    %c0_i32 = arith.constant 0 : i32
    %c0_i32_0 = arith.constant 0 : i32
    %c0_i32_1 = arith.constant 0 : i32
    %c0_i32_2 = arith.constant 0 : i32
    return %arg0, %c0_i32, %c0_i32_0, %c0_i32_1 : i32, i32, i32, i32
  }
  func.func @transform_3(%arg0: i32) -> (i32, i32, i32, i32) {
    %c0_i32 = arith.constant 0 : i32
    %c0_i32_0 = arith.constant 0 : i32
    %c0_i32_1 = arith.constant 0 : i32
    %c0_i32_2 = arith.constant 0 : i32
    return %arg0, %c0_i32, %c0_i32_0, %c0_i32_1 : i32, i32, i32, i32
  }
  func.func @transform_4(%arg0: i32) -> (i32, i32, i32, i32) {
    %c0_i32 = arith.constant 0 : i32
    %c0_i32_0 = arith.constant 0 : i32
    %c0_i32_1 = arith.constant 0 : i32
    %c0_i32_2 = arith.constant 0 : i32
    return %arg0, %c0_i32, %c0_i32_0, %c0_i32_1 : i32, i32, i32, i32
  }
  func.func @transform_5(%arg0: i32) -> (i32, i32, i32, i32) {
    %c0_i32 = arith.constant 0 : i32
    %c0_i32_0 = arith.constant 0 : i32
    %c0_i32_1 = arith.constant 0 : i32
    %c0_i32_2 = arith.constant 0 : i32
    return %arg0, %c0_i32, %c0_i32_0, %c0_i32_1 : i32, i32, i32, i32
  }
  func.func @transform_6(%arg0: i32) -> (i32, i32, i32, i32) {
    %c0_i32 = arith.constant 0 : i32
    %c0_i32_0 = arith.constant 0 : i32
    %c0_i32_1 = arith.constant 0 : i32
    %c0_i32_2 = arith.constant 0 : i32
    return %arg0, %c0_i32, %c0_i32_0, %c0_i32_1 : i32, i32, i32, i32
  }
  func.func @transform_7(%arg0: i32) -> (i32, i32, i32, i32) {
    %c0_i32 = arith.constant 0 : i32
    %c0_i32_0 = arith.constant 0 : i32
    %c0_i32_1 = arith.constant 0 : i32
    %c0_i32_2 = arith.constant 0 : i32
    return %arg0, %c0_i32, %c0_i32_0, %c0_i32_1 : i32, i32, i32, i32
  }
  func.func @transform_8(%arg0: i32) -> (i32, i32, i32) {
    %c0_i32 = arith.constant 0 : i32
    %c0_i32_0 = arith.constant 0 : i32
    %c0_i32_1 = arith.constant 0 : i32
    return %arg0, %c0_i32, %c0_i32_0 : i32, i32, i32
  }
  func.func @transform_9(%arg0: i32) -> (i32, i32, i32) {
    %c0_i32 = arith.constant 0 : i32
    %c0_i32_0 = arith.constant 0 : i32
    %c0_i32_1 = arith.constant 0 : i32
    return %arg0, %c0_i32, %c0_i32_0 : i32, i32, i32
  }
  func.func @transform_10(%arg0: i32) -> (i32, i32, i32) {
    %c0_i32 = arith.constant 0 : i32
    %c0_i32_0 = arith.constant 0 : i32
    %c0_i32_1 = arith.constant 0 : i32
    return %arg0, %c0_i32, %c0_i32_0 : i32, i32, i32
  }
  func.func @transform_11(%arg0: i32) -> (i32, i32, i32) {
    %c0_i32 = arith.constant 0 : i32
    %c0_i32_0 = arith.constant 0 : i32
    %c0_i32_1 = arith.constant 0 : i32
    return %arg0, %c0_i32, %c0_i32_0 : i32, i32, i32
  }
  func.func @transform_12(%arg0: i32) -> (i32, i32, i32) {
    %c0_i32 = arith.constant 0 : i32
    %c0_i32_0 = arith.constant 0 : i32
    %c0_i32_1 = arith.constant 0 : i32
    return %arg0, %c0_i32, %c0_i32_0 : i32, i32, i32
  }
  func.func @transform_13(%arg0: i32) -> (i32, i32, i32) {
    %c0_i32 = arith.constant 0 : i32
    %c0_i32_0 = arith.constant 0 : i32
    %c0_i32_1 = arith.constant 0 : i32
    return %arg0, %c0_i32, %c0_i32_0 : i32, i32, i32
  }
  func.func @transform_14(%arg0: i32) -> (i32, i32, i32) {
    %c0_i32 = arith.constant 0 : i32
    %c0_i32_0 = arith.constant 0 : i32
    %c0_i32_1 = arith.constant 0 : i32
    return %arg0, %c0_i32, %c0_i32_0 : i32, i32, i32
  }
  func.func @transform_15(%arg0: i32) -> (i32, i32, i32) {
    %c0_i32 = arith.constant 0 : i32
    %c0_i32_0 = arith.constant 0 : i32
    %c0_i32_1 = arith.constant 0 : i32
    return %arg0, %c0_i32, %c0_i32_0 : i32, i32, i32
  }
  func.func @transform_16(%arg0: i32) -> (i32, i32, i32) {
    %c0_i32 = arith.constant 0 : i32
    %c0_i32_0 = arith.constant 0 : i32
    %c0_i32_1 = arith.constant 0 : i32
    return %arg0, %c0_i32, %c0_i32_0 : i32, i32, i32
  }
  func.func @transform_17(%arg0: i32) -> (i32, i32) {
    %c0_i32 = arith.constant 0 : i32
    %c0_i32_0 = arith.constant 0 : i32
    %c0_i32_1 = arith.constant 0 : i32
    return %c0_i32, %c0_i32_0 : i32, i32
  }
}

</mosaic_0001>

<bundles_post_ra>
// kernel: tpu_custom_call.1
= control target key start
LH: loop header
LB: loop body
LE: loop exit
PB: predicated region body
PF: predicated region fallthrough
CT: control target
= control target key end

     0   :  { %s4367_s0 = inlined_call_operand.hbm [shape: f32[16,32], index: 0, kind: input, shape index: {}, may-alias: {0,17}]   ;;  %s4368_s1 = inlined_call_operand.vmem [shape: bf16[2,4,32,8], index: 1, kind: input, shape index: {}]   ;;  %s4369_s2 = inlined_call_operand.vmem [shape: bf16[2,4,32,8], index: 2, kind: input, shape index: {}]   ;;  %s4370_s3 = inlined_call_operand.vmem [shape: bf16[2,4,32,8], index: 3, kind: input, shape index: {}]   ;;  %s4371_s4 = inlined_call_operand.vmem [shape: f32[2,4,1,8], index: 4, kind: input, shape index: {}]   ;;  %s4372_s5 = inlined_call_operand.vmem [shape: f32[2,4,1,8], index: 5, kind: input, shape index: {}]   ;;  %s4373_s6 = inlined_call_operand.vmem [shape: f32[2,4,1,8], index: 6, kind: input, shape index: {}]   ;;  %s4374_s7 = inlined_call_operand.vmem [shape: bf16[2,4,8,32], index: 7, kind: input, shape index: {}]   ;;  %s4375_s8 = inlined_call_operand.vmem [shape: f32[2,1,32], index: 8, kind: input, shape index: {}]   ;;  %s4376_s9 = inlined_call_operand.vmem [shape: f32[2,1,32], index: 9, kind: input, shape index: {}]   ;;  %s4377_s10 = inlined_call_operand.vmem [shape: f32[2,1,32], index: 10, kind: input, shape index: {}]   ;;  %s4378_s11 = inlined_call_operand.vmem [shape: bf16[2,32,64], index: 11, kind: input, shape index: {}]   ;;  %s4379_s12 = inlined_call_operand.vmem [shape: f32[2,1,64], index: 12, kind: input, shape index: {}]   ;;  %s4380_s13 = inlined_call_operand.vmem [shape: bf16[2,64,32], index: 13, kind: input, shape index: {}]   ;;  %s4381_s14 = inlined_call_operand.vmem [shape: f32[2,1,32], index: 14, kind: input, shape index: {}]   ;;  %s4382_s15 = inlined_call_operand.vmem [shape: f32[2,1,32], index: 15, kind: input, shape index: {}]   ;;  %s4383_s16 = inlined_call_operand.vmem [shape: f32[2,1,32], index: 16, kind: input, shape index: {}]   ;;  %s4384_s17 = inlined_call_operand.hbm [shape: f32[16,32], index: 17, kind: output, shape index: {}, may-alias: {0,17}]  }
   0x1   :  { %4390 = sst [smem:[#allocation12_spill]] %s4367_s0 }
   0x2   :  { %4391 = sst [smem:[#allocation13_spill]] %s4368_s1 }
   0x3   :  { %4392 = sst [smem:[#allocation14_spill]] %s4369_s2 }
   0x4   :  { %4393 = sst [smem:[#allocation15_spill]] %s4370_s3 }
   0x5   :  { %4394 = sst [smem:[#allocation16_spill]] %s4371_s4 }
   0x6   :  { %4395 = sst [smem:[#allocation17_spill]] %s4372_s5 }
   0x7   :  { %4396 = sst [smem:[#allocation18_spill]] %s4373_s6 }
   0x8   :  { %4397 = sst [smem:[#allocation19_spill]] %s4374_s7 }
   0x9   :  { %4398 = sst [smem:[#allocation20_spill]] %s4375_s8 }
   0xa   :  { %4399 = sst [smem:[#allocation21_spill]] %s4384_s17 }
   0xb   :  { %22 = vsyncpa [#allocation3], 0 }
   0xc   :  { %23 = vsyncpa [#allocation4], 0  ;;  %s3900_s24 = smov 0  }
   0xd LB: > { %4400 = sst [smem:[#allocation8_spill]] %s3800_s24  ;;  %s3906_s25 = sadd.s32 4294967295, %s3800_s24   ;;  %s3800_s24 = sphi %s3900_s24, %s29_s24  }
   0xe   : > { %4401 = sst [smem:[#allocation9_spill]] %s3906_s25  ;;  %p3150_p0 = scmp.ge.s32.totalorder %s3800_s24, 1 }
   0xf   : > { %p492_p1 = scmp.lt.s32.totalorder %s3800_s24, 3  ;;  %s3802_s26 = smov [#allocation2]  }
  0x10   : > { %s504_s27 = sshll.u32 %s3802_s26, 4  ;;  %p3644_p4 = scmp.eq.s32.totalorder %s3906_s25, 0  ;;  %s505_s27 = int_to_ptr.vmem [resolvable:$true] %s504_s27 }
  0x11   : > { %p3911_p3 = pnand %p3150_p0, %p492_p1  ;;  %s3747_s29 = scalar_lea.vmem %s505_s27, 256 }
  0x12   : > { %p3748_p8 = scmp.ne.s32.totalorder %s505_s27, %s3747_s29  ;;  %p3755_p11 = scmp.lt.s32.totalorder %s505_s27, %s505_s27 }
  0x13   : > { %p3640_p5 = pneg %p3911_p3  ;;  %p3756_p12 = scmp.lt.s32.totalorder %s3747_s29, %s3747_s29 }
  0x15   : > { %p3641_p6 = pnand %p3644_p4, %p3640_p5  ;;  %p3757_p13 = por %p3756_p12, %p3755_p11 }
  0x17   : > { %p3738_p7 = pneg %p3641_p6 }
  0x19   : > { %p3750_p9 = pnand %p3748_p8, %p3738_p7 }
  0x1b   : > { %p3751_p10 = pneg %p3750_p9 }
  0x1d   : > { %p3758_p2 = pnand %p3757_p13, %p3751_p10 }
  0x1f   : > { %3761 = shalt.err (!%p3758_p2)
}
  0x20   : > { %s3803_s0 = smov 128   ;;  %s3804_s30 = smov 8  }
  0x21   : > { %s4403_s1 = sld [smem:[#allocation12_spill]] }
  0x23   : > { %631 = sbr.rel (%p3911_p3) target bundleno = 2270 (0x8de), region = 88 }
  0x27   : > { %3643 = dma.hbm_to_vmem [thread:$0]  (!%p3641_p6), %s4403_s1, 256, %s505_s27, [#allocation3], %s3803_s0, %s3803_s0, %s3804_s30  }
  0x28   : > { %3791 = dma.done.wait (%p3644_p4), [#allocation3], 256  }
  0x29   : > { %3793 = vsyncadd (%p3644_p4), [#allocation3], 4294967040  ;;  %p736_p0 = scmp.lt.s32.totalorder %s3906_s25, 1  ;;  %s4404_s27 = sld [smem:[#allocation13_spill]] }
  0x2a   : > { %s4405_s2 = sld [smem:[#allocation14_spill]] }
  0x2b   : > { %s3931_s20 = scalar_select %p736_p0, %s3906_s25, 1 }
  0x2c   : > { %s4407_s3 = sld [smem:[#allocation15_spill]] }
  0x2d   : > { %s3306_s21 = sshll.u32 %s3931_s20, 6  ;;  %s3161_s22 = sshll.u32 %s3931_s20, 2 }
  0x2e   : > { %s4409_s4 = sld [smem:[#allocation16_spill]]  ;;  %s798_s23 = scalar_lea.vmem %s4383_s16, %s3931_s20 }
  0x2f   : > { %s3938_s28 = scalar_lea.vmem %s4404_s27, %s3306_s21  ;;  %s4410_s5 = sld [smem:[#allocation17_spill]] }
  0x30   : > { %s3943_s30 = scalar_lea.vmem %s4405_s2, %s3306_s21  ;;  %s4411_s6 = sld [smem:[#allocation18_spill]] }
  0x31   : > { %4406 = sst [smem:[#allocation10_spill]] %s3943_s30  ;;  %s3309_s30 = sshll.u32 %s3931_s20, 4 }
  0x32   : > { %s3948_s1 = scalar_lea.vmem %s4407_s3, %s3306_s21  ;;  %s4413_s7 = sld [smem:[#allocation19_spill]] }
  0x33   : > { %4408 = sst [smem:[#allocation11_spill]] %s3948_s1  ;;  %s784_s21 = scalar_lea.vmem %s4379_s12, %s3931_s20 }
  0x34   : > { %s3953_s25 = scalar_lea.vmem %s4409_s4, %s3161_s22  ;;  %s3311_s3 = sshll.u32 %s3931_s20, 5 }
  0x35   : > { %s3958_s27 = scalar_lea.vmem %s4410_s5, %s3161_s22  ;;  %s3996_s8 = scalar_lea.vmem %s4380_s13, %s3311_s3 }
  0x36   : > { %s3963_s2 = scalar_lea.vmem %s4411_s6, %s3161_s22  ;;  %s3986_s6 = scalar_lea.vmem %s4378_s11, %s3309_s30 }
  0x37   : > { %s792_s5 = scalar_lea.vmem %s4381_s14, %s3931_s20  ;;  %s795_s22 = scalar_lea.vmem %s4382_s15, %s3931_s20 }
  0x38   : > { %s3973_s17 = scalar_lea.vmem %s4413_s7, %s3309_s30  ;;  %s4414_s18 = sld [smem:[#allocation9_spill]] }
  0x3e   : > { %p4415_p1 = scmp.ne.s32.totalorder %s4414_s18, 0 }
  0x40   : > { %803 = sbr.rel (%p4415_p1) target bundleno = 71 (0x47), region = 96 }
  0x45   : > { %v804_v0 = vld [vmem:[#allocation2] sm:$0xff]  ;;  %vm806_vm0 = vcmask 261120   ;;  %v805_v1 = vld [vmem:[#allocation2 + $0x8] sm:$0xff] }
  0x46   : > { %807 = vst.msk [vmem:[#allocation5] sm:$0xff] %vm806_vm0, %v804_v0  ;;  %808 = vst.msk [vmem:[#allocation5 + $0x8] sm:$0xff] %vm806_vm0, %v805_v1 }
  0x47 PF: > { %s4416_s7 = sld [smem:[#allocation10_spill]]  ;;  %v3664_v2 = vld [vmem:[%s3938_s28 + $0x8] sm:$0xff]   ;;  %v3805_v3 = vmov 0.0   ;;  %v3666_v5 = vld [vmem:[%s3938_s28] sm:$0xff]   ;;  %vm3806_vm1 = vmmov 0   ;;  %vm835_vm2 = vcmask 261120   ;;  %s4420_s19 = scalar_lea.vmem %s4376_s9, %s3931_s20 }
  0x48   : > { %3396 = vmatprep.subr.bf16.mxu0 %v3805_v3  ;;  %3404 = vmatprep.subr.bf16.mxu1 %v3805_v3  ;;  %s4417_s29 = sld [smem:[#allocation11_spill]]  ;;  %v3669_v11 = vld [vmem:[%s3938_s28 + $0x18] sm:$0xff]   ;;  %v3671_v13 = vld [vmem:[%s3938_s28 + $0x10] sm:$0xff]   ;;  %v3676_v18 = vld [vmem:[%s3938_s28 + $0x28] sm:$0xff]   ;;  %vm1634_vm3 = vcmask 64512   ;;  %vm2102_vm4 = vcmask 1043456   ;;  %s4421_s4 = scalar_lea.vmem %s4377_s10, %s3931_s20 }
  0x49   : > { %3397 = vmatpush3.bf16.msra.mxu0 %v3664_v2  ;;  %3400 = vmatprep.mubr.msk.bf16.mxu0 %vm3806_vm1, %v3805_v3  ;;  %v3678_v20 = vld [vmem:[%s3938_s28 + $0x20] sm:$0xff]   ;;  %v3683_v23 = vld [vmem:[%s3938_s28 + $0x38] sm:$0xff]   ;;  %v3685_v25 = vld [vmem:[%s3938_s28 + $0x30] sm:$0xff]   ;;  %s4418_s28 = sld [smem:[#allocation20_spill]]  ;;  %vm2837_vm5 = vcmask 523264  }
  0x4a   : > { %3398 = vmatprep.subr.bf16.mxu0 %v3805_v3  ;;  %3408 = vmatprep.mubr.msk.bf16.mxu1 %vm3806_vm1, %v3805_v3  ;;  %v3175_v30 = vld [vmem:[%s3958_s27] ss:$0 sm:$0xff]  ;;  %v3197_v58 = vld [vmem:[%s3958_s27 + $0x1] ss:$0 sm:$0xff] }
  0x4b   : > { %v3171_v32 = vld [vmem:[%s3953_s25] ss:$0 sm:$0xff]  ;;  %v3188_v61 = vld [vmem:[%s3953_s25 + $0x1] ss:$0 sm:$0xff] }
  0x4d   : > { %v3665_v4 = vld [vmem:[%s4416_s7 + $0x8] sm:$0xff]   ;;  %v3667_v6 = vld [vmem:[%s4416_s7] sm:$0xff]   ;;  %v809_v7 = vld [vmem:[#allocation5] sm:$0xff]  ;;  %3399 = vmatpush3.bf16.msra.mxu0 %v3666_v5 }
  0x4e   : > { %3405 = vmatpush3.bf16.msra.mxu1 %v3665_v4  ;;  %v810_v8 = vld [vmem:[#allocation5 + $0x8] sm:$0xff]  ;;  %v3668_v10 = vld [vmem:[%s4417_s29 + $0x8] sm:$0xff]   ;;  %3412 = vmatprep.subr.bf16.mxu0 %v3805_v3  ;;  %v3670_v12 = vld [vmem:[%s4417_s29] sm:$0xff]  }
  0x4f   : > { %3406 = vmatprep.subr.bf16.mxu1 %v3805_v3  ;;  %v4024_v9 = vpack.c.bf16 %v810_v8, %v809_v7  ;;  %v3672_v14 = vld [vmem:[%s4416_s7 + $0x18] sm:$0xff]   ;;  %v3674_v16 = vld [vmem:[%s4416_s7 + $0x10] sm:$0xff]   ;;  %v3677_v19 = vld [vmem:[%s4416_s7 + $0x28] sm:$0xff]  }
  0x50   : > { %v3673_v15 = vld [vmem:[%s4417_s29 + $0x18] sm:$0xff]   ;;  %v3675_v17 = vld [vmem:[%s4417_s29 + $0x10] sm:$0xff]   ;;  %v3679_v21 = vld [vmem:[%s4416_s7 + $0x20] sm:$0xff]  }
  0x51   : > { %3401 = vmatmul.mubr.msk.bf16.vlgmr.msra.gmra.mxu0 %vm835_vm2, %v4024_v9  ;;  %v3680_v22 = vld [vmem:[%s4417_s29 + $0x28] sm:$0xff]   ;;  %v3681_v24 = vld [vmem:[%s4417_s29 + $0x20] sm:$0xff]   ;;  %v3682_v26 = vld [vmem:[%s4416_s7 + $0x38] sm:$0xff]  }
  0x52   : > { %3407 = vmatpush3.bf16.msra.mxu1 %v3667_v6  ;;  %3413 = vmatpush3.bf16.msra.mxu0 %v3668_v10  ;;  %v3684_v27 = vld [vmem:[%s4416_s7 + $0x30] sm:$0xff]   ;;  %v3686_v28 = vld [vmem:[%s4417_s29 + $0x38] sm:$0xff]  }
  0x53   : > { %3420 = vmatprep.subr.bf16.mxu1 %v3805_v3  ;;  %3414 = vmatprep.subr.bf16.mxu0 %v3805_v3  ;;  %v3687_v29 = vld [vmem:[%s4417_s29 + $0x30] sm:$0xff]   ;;  %s3807_s29 = smov [#allocation5]  }
  0x54   : > { %3416 = vmatprep.mubr.msk.bf16.mxu0 %vm3806_vm1, %v3805_v3 }
  0x55   : > { %3409 = vmatmul.mubr.msk.bf16.vlgmr.msra.gmra.mxu1 %vm835_vm2, %v4024_v9 }
  0x56   : > { %3421 = vmatpush3.bf16.msra.mxu1 %v3669_v11  ;;  %3424 = vmatprep.mubr.msk.bf16.mxu1 %vm3806_vm1, %v3805_v3 }
  0x57   : > { %3422 = vmatprep.subr.bf16.mxu1 %v3805_v3  ;;  %3415 = vmatpush3.bf16.msra.mxu0 %v3670_v12 }
  0x58   : > { %3428 = vmatprep.subr.bf16.mxu0 %v3805_v3 }
  0x5a   : > { %3423 = vmatpush3.bf16.msra.mxu1 %v3671_v13  ;;  %3417 = vmatmul.mubr.msk.bf16.vlgmr.msra.gmra.mxu0 %vm835_vm2, %v4024_v9 }
  0x5b   : > { %3436 = vmatprep.subr.bf16.mxu1 %v3805_v3  ;;  %3429 = vmatpush3.bf16.msra.mxu0 %v3672_v14 }
  0x5c   : > { %3430 = vmatprep.subr.bf16.mxu0 %v3805_v3  ;;  %3432 = vmatprep.mubr.msk.bf16.mxu0 %vm3806_vm1, %v3805_v3 }
  0x5d   : > { %3425 = vmatmul.mubr.msk.bf16.vlgmr.msra.gmra.mxu1 %vm835_vm2, %v4024_v9 }
  0x5e   : > { %3437 = vmatpush3.bf16.msra.mxu1 %v3673_v15  ;;  %3440 = vmatprep.mubr.msk.bf16.mxu1 %vm3806_vm1, %v3805_v3  ;;  %v3224_v15 = vld [vmem:[%s3958_s27 + $0x2] ss:$0 sm:$0xff] }
  0x5f   : > { %3438 = vmatprep.subr.bf16.mxu1 %v3805_v3  ;;  %3431 = vmatpush3.bf16.msra.mxu0 %v3674_v16 }
  0x60   : > { %3444 = vmatprep.subr.bf16.mxu0 %v3805_v3 }
  0x62   : > { %3439 = vmatpush3.bf16.msra.mxu1 %v3675_v17  ;;  %3433 = vmatmul.mubr.msk.bf16.vlgmr.msra.gmra.mxu0 %vm835_vm2, %v4024_v9 }
  0x63   : > { %3452 = vmatprep.subr.bf16.mxu1 %v3805_v3  ;;  %3445 = vmatpush3.bf16.msra.mxu0 %v3676_v18  ;;  %v3215_v18 = vld [vmem:[%s3953_s25 + $0x2] ss:$0 sm:$0xff] }
  0x64   : > { %3446 = vmatprep.subr.bf16.mxu0 %v3805_v3  ;;  %3448 = vmatprep.mubr.msk.bf16.mxu0 %vm3806_vm1, %v3805_v3 }
  0x65   : > { %3441 = vmatmul.mubr.msk.bf16.vlgmr.msra.gmra.mxu1 %vm835_vm2, %v4024_v9 }
  0x66   : > { %3453 = vmatpush3.bf16.msra.mxu1 %v3677_v19  ;;  %3456 = vmatprep.mubr.msk.bf16.mxu1 %vm3806_vm1, %v3805_v3 }
  0x67   : > { %3454 = vmatprep.subr.bf16.mxu1 %v3805_v3  ;;  %3447 = vmatpush3.bf16.msra.mxu0 %v3678_v20 }
  0x68   : > { %3460 = vmatprep.subr.bf16.mxu0 %v3805_v3 }
  0x6a   : > { %3455 = vmatpush3.bf16.msra.mxu1 %v3679_v21  ;;  %3449 = vmatmul.mubr.msk.bf16.vlgmr.msra.gmra.mxu0 %vm835_vm2, %v4024_v9 }
  0x6b   : > { %3468 = vmatprep.subr.bf16.mxu1 %v3805_v3  ;;  %3461 = vmatpush3.bf16.msra.mxu0 %v3680_v22 }
  0x6c   : > { %3462 = vmatprep.subr.bf16.mxu0 %v3805_v3  ;;  %3464 = vmatprep.mubr.msk.bf16.mxu0 %vm3806_vm1, %v3805_v3 }
  0x6d   : > { %3457 = vmatmul.mubr.msk.bf16.vlgmr.msra.gmra.mxu1 %vm835_vm2, %v4024_v9 }
  0x6e   : > { %3469 = vmatpush3.bf16.msra.mxu1 %v3683_v23  ;;  %3472 = vmatprep.mubr.msk.bf16.mxu1 %vm3806_vm1, %v3805_v3 }
  0x6f   : > { %3470 = vmatprep.subr.bf16.mxu1 %v3805_v3  ;;  %3463 = vmatpush3.bf16.msra.mxu0 %v3681_v24 }
  0x70   : > { %3476 = vmatprep.subr.bf16.mxu0 %v3805_v3 }
  0x72   : > { %3471 = vmatpush3.bf16.msra.mxu1 %v3685_v25  ;;  %3465 = vmatmul.mubr.msk.bf16.vlgmr.msra.gmra.mxu0 %vm835_vm2, %v4024_v9 }
  0x73   : > { %3484 = vmatprep.subr.bf16.mxu1 %v3805_v3  ;;  %3477 = vmatpush3.bf16.msra.mxu0 %v3682_v26 }
  0x74   : > { %3480 = vmatprep.mubr.msk.bf16.mxu0 %vm3806_vm1, %v3805_v3  ;;  %3478 = vmatprep.subr.bf16.mxu0 %v3805_v3 }
  0x75   : > { %3473 = vmatmul.mubr.msk.bf16.vlgmr.msra.gmra.mxu1 %vm835_vm2, %v4024_v9 }
  0x76   : > { %3488 = vmatprep.mubr.msk.bf16.mxu1 %vm3806_vm1, %v3805_v3  ;;  %3485 = vmatpush3.bf16.msra.mxu1 %v3686_v28 }
  0x77   : > { %3479 = vmatpush3.bf16.msra.mxu0 %v3684_v27  ;;  %3486 = vmatprep.subr.bf16.mxu1 %v3805_v3 }
  0x78   : > { %3492 = vmatprep.subr.bf16.mxu0 %v3805_v3 }
  0x7a   : > { %3481 = vmatmul.mubr.msk.bf16.vlgmr.msra.gmra.mxu0 %vm835_vm2, %v4024_v9  ;;  %3487 = vmatpush3.bf16.msra.mxu1 %v3687_v29 }
  0x7b   : > { %3494 = vmatprep.mubr.msk.bf16.mxu0 %vm3806_vm1, %v3805_v3  ;;  %3498 = vmatprep.subr.bf16.mxu1 %v3805_v3 }
  0x7d   : > { %3489 = vmatmul.mubr.msk.bf16.vlgmr.msra.gmra.mxu1 %vm835_vm2, %v4024_v9 }
  0x7e   : > { %3500 = vmatprep.mubr.msk.bf16.mxu1 %vm3806_vm1, %v3805_v3 }
 0x111   : > { %v873_v31 = vpop.f32.mrf.mxu0 }
 0x112   : > { %v874_v37 = vadd.f32 %v3171_v32, %v873_v31 }
 0x113   : > { %v3402_v35 = vpop.f32.mrf.mxu0 }
 0x114   : > { %v1008_v45 = vmul.f32 0.35355338, %v874_v37 }
 0x115   : > { %v937_v33 = vpop.f32.mrf.mxu1  ;;  %v876_v39 = vpop.f32.mrf.mxu0 }
 0x116   : > { %v938_v34 = vadd.f32 %v3175_v30, %v937_v33  ;;  %v877_v46 = vadd.f32 %v3171_v32, %v876_v39  ;;  %v1610_v53 = vpack.c.bf16 %v1008_v45, %v1008_v45 }
 0x117   : > { %v3410_v36 = vpop.f32.mrf.mxu1  ;;  %v3403_v43 = vpop.f32.mrf.mxu0 }
 0x118   : > { %v1618_v38 = vpack.c.bf16 %v938_v34, %v938_v34  ;;  %v1009_v54 = vmul.f32 0.35355338, %v877_v46  ;;  %v3251_v46 = vld [vmem:[%s3958_s27 + $0x3] ss:$0 sm:$0xff]  ;;  %s4419_s27 = scalar_lea.vmem %s4418_s28, %s3931_s20 }
 0x119   : > { %v940_v40 = vpop.f32.mrf.mxu1 }
 0x11a   : > { %v1639_v41 = vsel %vm1634_vm3, %v1618_v38, 0  ;;  %v941_v42 = vadd.f32 %v3175_v30, %v940_v40  ;;  %v4119_v48 = vpop.f32.mrf.mxu0  ;;  %v1611_v60 = vpack.c.bf16 %v1009_v54, %v1009_v54 }
 0x11b   : > { %v3411_v44 = vpop.f32.mrf.mxu1  ;;  %3493 = vmatpush3.bf16.xpose.msra.mxu0 %v1639_v41 }
 0x11c   : > { %v1619_v47 = vpack.c.bf16 %v941_v42, %v941_v42  ;;  %3504 = vmatprep.subr.bf16.mxu0 %v3805_v3  ;;  %v3418_v51 = vpop.f32.mrf.mxu0 }
 0x11d   : > { %v1069_v49 = vpop.f32.mrf.mxu1 }
 0x11e   : > { %v1685_v50 = vsel %vm1634_vm3, %v1619_v47, 0  ;;  %v4123_v55 = vpop.f32.mrf.mxu0  ;;  %v1070_v2 = vadd.f32 %v3188_v61, %v1069_v49  ;;  %v3242_v47 = vld [vmem:[%s3953_s25 + $0x3] ss:$0 sm:$0xff] }
 0x11f   : > { %v3426_v52 = vpop.f32.mrf.mxu1  ;;  %3499 = vmatpush3.bf16.xpose.msra.mxu1 %v1685_v50 }
 0x120   : > { %3510 = vmatprep.subr.bf16.mxu1 %v3805_v3  ;;  %v3419_v57 = vpop.f32.mrf.mxu0  ;;  %v1208_v11 = vmul.f32 0.35355338, %v1070_v2 }
 0x121   : > { %v1072_v56 = vpop.f32.mrf.mxu1 }
 0x122   : > { %3495 = vmatmul.mubr.msk.bf16.vlgmr.msra.gmra.mxu0 %vm1634_vm3, %v1610_v53  ;;  %v1135_v62 = vpop.f32.mrf.mxu0  ;;  %v1073_v12 = vadd.f32 %v3188_v61, %v1072_v56  ;;  %v1612_v22 = vpack.c.bf16 %v1208_v11, %v1208_v11  ;;  %v3179_v56 = vld [vmem:[%s3963_s2] ss:$0 sm:$0xff] }
 0x123   : > { %v3427_v59 = vpop.f32.mrf.mxu1  ;;  %3506 = vmatprep.mubr.msk.bf16.mxu0 %vm3806_vm1, %v3805_v3  ;;  %v1136_v63 = vadd.f32 %v3197_v58, %v1135_v62 }
 0x124   : > { %v3434_v1 = vpop.f32.mrf.mxu0  ;;  %v1209_v23 = vmul.f32 0.35355338, %v1073_v12 }
 0x125   : > { %v4131_v0 = vpop.f32.mrf.mxu1  ;;  %v1620_v4 = vpack.c.bf16 %v1136_v63, %v1136_v63 }
 0x126   : > { %3501 = vmatmul.mubr.msk.bf16.vlgmr.msra.gmra.mxu1 %vm1634_vm3, %v1611_v60  ;;  %v1138_v6 = vpop.f32.mrf.mxu0  ;;  %v1613_v32 = vpack.c.bf16 %v1209_v23, %v1209_v23  ;;  %v1002_v60 = vadd.f32 %v3179_v56, %v4119_v48 }
 0x127   : > { %v3442_v5 = vpop.f32.mrf.mxu1  ;;  %3512 = vmatprep.mubr.msk.bf16.mxu1 %vm3806_vm1, %v3805_v3  ;;  %v1731_v7 = vsel %vm1634_vm3, %v1620_v4, 0  ;;  %v1139_v8 = vadd.f32 %v3197_v58, %v1138_v6  ;;  %v1005_v6 = vadd.f32 %v3179_v56, %v4123_v55 }
 0x128   : > { %v3435_v10 = vpop.f32.mrf.mxu0  ;;  %3505 = vmatpush3.bf16.xpose.msra.mxu0 %v1731_v7  ;;  %v1626_v5 = vpack.c.bf16 %v1002_v60, %v1002_v60 }
 0x129   : > { %v4137_v9 = vpop.f32.mrf.mxu1  ;;  %v1621_v13 = vpack.c.bf16 %v1139_v8, %v1139_v8  ;;  %3516 = vmatprep.subr.bf16.mxu0 %v3805_v3  ;;  %v1627_v11 = vpack.c.bf16 %v1005_v6, %v1005_v6 }
 0x12a   : > { %v1269_v16 = vpop.f32.mrf.mxu0  ;;  %v2104_v48 = vsel %vm2102_vm4, %v1626_v5, 0 }
 0x12b   : > { %v3443_v14 = vpop.f32.mrf.mxu1  ;;  %v1777_v17 = vsel %vm1634_vm3, %v1621_v13, 0  ;;  %v1270_v25 = vadd.f32 %v3215_v18, %v1269_v16  ;;  %v2150_v55 = vsel %vm2102_vm4, %v1627_v11, 0 }
 0x12c   : > { %v3450_v21 = vpop.f32.mrf.mxu0  ;;  %3511 = vmatpush3.bf16.xpose.msra.mxu1 %v1777_v17 }
 0x12d   : > { %v1335_v19 = vpop.f32.mrf.mxu1  ;;  %3522 = vmatprep.subr.bf16.mxu1 %v3805_v3  ;;  %v1408_v34 = vmul.f32 0.35355338, %v1270_v25 }
 0x12e   : > { %v1336_v20 = vadd.f32 %v3224_v15, %v1335_v19  ;;  %v1272_v27 = vpop.f32.mrf.mxu0 }
 0x12f   : > { %v3458_v24 = vpop.f32.mrf.mxu1  ;;  %3507 = vmatmul.mubr.msk.bf16.vlgmr.msra.gmra.mxu0 %vm1634_vm3, %v1612_v22  ;;  %v1273_v35 = vadd.f32 %v3215_v18, %v1272_v27  ;;  %v1614_v41 = vpack.c.bf16 %v1408_v34, %v1408_v34 }
 0x130   : > { %v1622_v26 = vpack.c.bf16 %v1336_v20, %v1336_v20  ;;  %v3451_v31 = vpop.f32.mrf.mxu0  ;;  %3518 = vmatprep.mubr.msk.bf16.mxu0 %vm3806_vm1, %v3805_v3 }
 0x131   : > { %v1338_v28 = vpop.f32.mrf.mxu1  ;;  %v1409_v42 = vmul.f32 0.35355338, %v1273_v35 }
 0x132   : > { %v1823_v29 = vsel %vm1634_vm3, %v1622_v26, 0  ;;  %v1339_v30 = vadd.f32 %v3224_v15, %v1338_v28  ;;  %v4148_v37 = vpop.f32.mrf.mxu0 }
 0x133   : > { %3517 = vmatpush3.bf16.xpose.msra.mxu0 %v1823_v29  ;;  %v3459_v33 = vpop.f32.mrf.mxu1  ;;  %3513 = vmatmul.mubr.msk.bf16.vlgmr.msra.gmra.mxu1 %vm1634_vm3, %v1613_v32  ;;  %v1615_v50 = vpack.c.bf16 %v1409_v42, %v1409_v42 }
 0x134   : > { %v1623_v36 = vpack.c.bf16 %v1339_v30, %v1339_v30  ;;  %3528 = vmatprep.subr.bf16.mxu0 %v3805_v3  ;;  %v3466_v39 = vpop.f32.mrf.mxu0  ;;  %3524 = vmatprep.mubr.msk.bf16.mxu1 %vm3806_vm1, %v3805_v3 }
 0x135   : > { %v1469_v40 = vpop.f32.mrf.mxu1 }
 0x136   : > { %v1869_v38 = vsel %vm1634_vm3, %v1623_v36, 0  ;;  %v4155_v43 = vpop.f32.mrf.mxu0  ;;  %v1470_v54 = vadd.f32 %v3242_v47, %v1469_v40 }
 0x137   : > { %3523 = vmatpush3.bf16.xpose.msra.mxu1 %v1869_v38  ;;  %v3474_v44 = vpop.f32.mrf.mxu1 }
 0x138   : > { %3534 = vmatprep.subr.bf16.mxu1 %v3805_v3  ;;  %v3467_v45 = vpop.f32.mrf.mxu0  ;;  %v1608_v62 = vmul.f32 0.35355338, %v1470_v54 }
 0x139   : > { %v1472_v49 = vpop.f32.mrf.mxu1 }
 0x13a   : > { %3519 = vmatmul.mubr.msk.bf16.vlgmr.msra.gmra.mxu0 %vm1634_vm3, %v1614_v41  ;;  %v1535_v51 = vpop.f32.mrf.mxu0  ;;  %v1473_v4 = vadd.f32 %v3242_v47, %v1472_v49  ;;  %v1616_v7 = vpack.c.bf16 %v1608_v62, %v1608_v62 }
 0x13b   : > { %3530 = vmatprep.mubr.msk.bf16.mxu0 %vm3806_vm1, %v3805_v3  ;;  %v3475_v52 = vpop.f32.mrf.mxu1  ;;  %v1536_v53 = vadd.f32 %v3251_v46, %v1535_v51 }
 0x13c   : > { %v3482_v57 = vpop.f32.mrf.mxu0  ;;  %v1609_v10 = vmul.f32 0.35355338, %v1473_v4 }
 0x13d   : > { %v1624_v58 = vpack.c.bf16 %v1536_v53, %v1536_v53  ;;  %v4183_v13 = vpop.f32.mrf.mxu1 }
 0x13e   : > { %3525 = vmatmul.mubr.msk.bf16.vlgmr.msra.gmra.mxu1 %vm1634_vm3, %v1615_v50  ;;  %v1538_v59 = vpop.f32.mrf.mxu0  ;;  %v1617_v12 = vpack.c.bf16 %v1609_v10, %v1609_v10 }
 0x13f   : > { %3536 = vmatprep.mubr.msk.bf16.mxu1 %vm3806_vm1, %v3805_v3  ;;  %v1915_v61 = vsel %vm1634_vm3, %v1624_v58, 0  ;;  %v1539_v63 = vadd.f32 %v3251_v46, %v1538_v59  ;;  %v3490_v14 = vpop.f32.mrf.mxu1 }
 0x140   : > { %v3483_v1 = vpop.f32.mrf.mxu0  ;;  %3529 = vmatpush3.bf16.xpose.msra.mxu0 %v1915_v61 }
 0x141   : > { %v1625_v2 = vpack.c.bf16 %v1539_v63, %v1539_v63  ;;  %3540 = vmatprep.subr.bf16.mxu0 %v3805_v3  ;;  %v4185_v15 = vpop.f32.mrf.mxu1 }
 0x143   : > { %v1961_v8 = vsel %vm1634_vm3, %v1625_v2, 0  ;;  %v3491_v16 = vpop.f32.mrf.mxu1 }
 0x144   : > { %3535 = vmatpush3.bf16.xpose.msra.mxu1 %v1961_v8 }
 0x145   : > { %3546 = vmatprep.subr.bf16.mxu1 %v3805_v3 }
 0x147   : > { %3531 = vmatmul.mubr.msk.bf16.vlgmr.msra.gmra.mxu0 %vm1634_vm3, %v1616_v7 }
 0x148   : > { %3541 = vmatpush3.bf16.msra.mxu0 %v2104_v48  ;;  %3542 = vmatprep.mubr.msk.bf16.mxu0 %vm3806_vm1, %v3805_v3 }
 0x149   : > { %3552 = vmatprep.subr.bf16.mxu0 %v3805_v3 }
 0x14b   : > { %3537 = vmatmul.mubr.msk.bf16.vlgmr.msra.gmra.mxu1 %vm1634_vm3, %v1617_v12 }
 0x14c   : > { %3547 = vmatpush3.bf16.msra.mxu1 %v2150_v55  ;;  %3548 = vmatprep.mubr.msk.bf16.mxu1 %vm3806_vm1, %v3805_v3 }
 0x14d   : > { %3558 = vmatprep.subr.bf16.mxu1 %v3805_v3 }
 0x1e2   : > { %v1675_v17 = vpop.f32.mrf.mxu0 }
 0x1e3   : > { %v2003_v18 = vsel %vm1634_vm3, %v1675_v17, -inf }
 0x1e4   : > { %2004 = vmax.xlane.f32.xlu0 %v2003_v18  ;;  %v3496_v19 = vpop.f32.mrf.mxu0 }
 0x1e6   : > { %v1678_v20 = vpop.f32.mrf.mxu0  ;;  %v1721_v21 = vpop.f32.mrf.mxu1 }
 0x1e7   : > { %v2006_v22 = vsel %vm1634_vm3, %v1721_v21, -inf }
 0x1e8   : > { %v3502_v23 = vpop.f32.mrf.mxu1  ;;  %2007 = vmax.xlane.f32.xlu0 %v2006_v22  ;;  %v3497_v24 = vpop.f32.mrf.mxu0 }
 0x1ea   : > { %v1724_v25 = vpop.f32.mrf.mxu1 }
 0x1ec   : > { %v3503_v26 = vpop.f32.mrf.mxu1 }
 0x1ef   : > { %v1767_v27 = vpop.f32.mrf.mxu0 }
 0x1f0   : > { %v2009_v28 = vsel %vm1634_vm3, %v1767_v27, -inf }
 0x1f1   : > { %2010 = vmax.xlane.f32.xlu1 %v2009_v28  ;;  %v3508_v29 = vpop.f32.mrf.mxu0 }
 0x1f3   : > { %v1770_v30 = vpop.f32.mrf.mxu0  ;;  %v1813_v31 = vpop.f32.mrf.mxu1 }
 0x1f4   : > { %v2012_v32 = vsel %vm1634_vm3, %v1813_v31, -inf }
 0x1f5   : > { %v3514_v33 = vpop.f32.mrf.mxu1  ;;  %2013 = vmax.xlane.f32.xlu1 %v2012_v32  ;;  %v3509_v34 = vpop.f32.mrf.mxu0 }
 0x1f7   : > { %v1816_v35 = vpop.f32.mrf.mxu1 }
 0x1f9   : > { %v3515_v38 = vpop.f32.mrf.mxu1 }
 0x1fa   : > { %v1859_v36 = vpop.f32.mrf.mxu0 }
 0x1fb   : > { %v2015_v39 = vsel %vm1634_vm3, %v1859_v36, -inf }
 0x1fc   : > { %2016 = vmax.xlane.f32.xlu0 %v2015_v39  ;;  %v3520_v40 = vpop.f32.mrf.mxu0 }
 0x1fe   : > { %v1862_v41 = vpop.f32.mrf.mxu0  ;;  %v1905_v42 = vpop.f32.mrf.mxu1 }
 0x1ff   : > { %v2018_v44 = vsel %vm1634_vm3, %v1905_v42, -inf }
 0x200   : > { %v3526_v45 = vpop.f32.mrf.mxu1  ;;  %2019 = vmax.xlane.f32.xlu1 %v2018_v44  ;;  %v3521_v46 = vpop.f32.mrf.mxu0  ;;  %v3206_v44 = vld [vmem:[%s3963_s2 + $0x1] ss:$0 sm:$0xff] }
 0x201   : > { %v1202_v45 = vadd.f32 %v3206_v44, %v4131_v0 }
 0x202   : > { %v1908_v47 = vpop.f32.mrf.mxu1 }
 0x203   : > { %v1628_v47 = vpack.c.bf16 %v1202_v45, %v1202_v45 }
 0x204   : > { %v3527_v49 = vpop.f32.mrf.mxu1 }
 0x205   : > { %v1205_v49 = vadd.f32 %v3206_v44, %v4137_v9 }
 0x207   : > { %v1951_v50 = vpop.f32.mrf.mxu0 }
 0x208   : > { %v2021_v51 = vsel %vm1634_vm3, %v1951_v50, -inf }
 0x209   : > { %2022 = vmax.xlane.f32.xlu0 %v2021_v51  ;;  %v3532_v52 = vpop.f32.mrf.mxu0 }
 0x20b   : > { %v1954_v53 = vpop.f32.mrf.mxu0  ;;  %v1997_v54 = vpop.f32.mrf.mxu1 }
 0x20c   : > { %v2024_v56 = vsel %vm1634_vm3, %v1997_v54, -inf }
 0x20d   : > { %v3538_v57 = vpop.f32.mrf.mxu1  ;;  %2025 = vmax.xlane.f32.xlu1 %v2024_v56  ;;  %v3533_v58 = vpop.f32.mrf.mxu0  ;;  %v1629_v56 = vpack.c.bf16 %v1205_v49, %v1205_v49 }
 0x20f   : > { %v2000_v59 = vpop.f32.mrf.mxu1  ;;  %v2242_v9 = vsel %vm2102_vm4, %v1629_v56, 0 }
 0x210   : > { %v3233_v59 = vld [vmem:[%s3963_s2 + $0x2] ss:$0 sm:$0xff] }
 0x211   : > { %v3539_v60 = vpop.f32.mrf.mxu1 }
 0x26d   : > { %v2005_v61 = vpop.xlane.xlu0 %2004 }
 0x26e   : > { %v2027_v62 = vsub.f32 %v1675_v17, %v2005_v61  ;;  %v1402_v61 = vadd.f32 %v3233_v59, %v4148_v37 }
 0x270   : > { %v2035_v63 = vmul.f32 1.442695, %v2027_v62 }
 0x271   : > { %v2008_v1 = vpop.xlane.xlu0 %2007 }
 0x272   : > { %3694 = vpow2.f32 %v2035_v63  ;;  %v2028_v2 = vsub.f32 %v1721_v21, %v2008_v1  ;;  %v1630_v1 = vpack.c.bf16 %v1402_v61, %v1402_v61 }
 0x274   : > { %v2037_v4 = vmul.f32 1.442695, %v2028_v2  ;;  %v1405_v2 = vadd.f32 %v3233_v59, %v4155_v43 }
 0x276   : > { %3696 = vpow2.f32 %v2037_v4 }
 0x27a   : > { %v2011_v5 = vpop.xlane.xlu1 %2010 }
 0x27b   : > { %v2029_v6 = vsub.f32 %v1767_v27, %v2011_v5  ;;  %v3260_v5 = vld [vmem:[%s3963_s2 + $0x3] ss:$0 sm:$0xff]  ;;  %s2936_s2 = sshll.u32 %s3807_s29, 4  ;;  %s2937_s2 = int_to_ptr.vmem [resolvable:$true] %s2936_s2 }
 0x27c   : > { %v1602_v37 = vadd.f32 %v3260_v5, %v4183_v13  ;;  %p3769_p6 = scmp.lt.s32.totalorder %s2937_s2, %s2937_s2 }
 0x27d   : > { %v2039_v8 = vmul.f32 1.442695, %v2029_v6 }
 0x27e   : > { %v2014_v10 = vpop.xlane.xlu1 %2013 }
 0x27f   : > { %v3695_v7 = vpop.eup %3694  ;;  %3698 = vpow2.f32 %v2039_v8  ;;  %v2030_v11 = vsub.f32 %v1813_v31, %v2014_v10  ;;  %v2288_v8 = vsel %vm2102_vm4, %v1630_v1, 0  ;;  %v1631_v10 = vpack.c.bf16 %v1405_v2, %v1405_v2 }
 0x280   : > { %v2051_v48 = vsel %vm1634_vm3, %v3695_v7, 0.0 }
 0x281   : > { %2052 = vadd.xlane.f32.xlu0 %v2051_v48  ;;  %v2041_v55 = vmul.f32 1.442695, %v2030_v11 }
 0x283   : > { %v3697_v12 = vpop.eup %3696  ;;  %3700 = vpow2.f32 %v2041_v55  ;;  %v1632_v55 = vpack.c.bf16 %v1602_v37, %v1602_v37 }
 0x284   : > { %v2054_v14 = vsel %vm1634_vm3, %v3697_v12, 0.0 }
 0x285   : > { %2055 = vadd.xlane.f32.xlu1 %v2054_v14  ;;  %v2017_v16 = vpop.xlane.xlu0 %2016  ;;  %v1605_v14 = vadd.f32 %v3260_v5, %v4185_v15 }
 0x286   : > { %v2031_v17 = vsub.f32 %v1859_v36, %v2017_v16 }
 0x288   : > { %v2043_v18 = vmul.f32 1.442695, %v2031_v17 }
 0x289   : > { %v2020_v19 = vpop.xlane.xlu1 %2019 }
 0x28a   : > { %3702 = vpow2.f32 %v2043_v18  ;;  %v2032_v20 = vsub.f32 %v1905_v42, %v2020_v19  ;;  %v2380_v19 = vsel %vm2102_vm4, %v1632_v55, 0 }
 0x28c   : > { %v2045_v21 = vmul.f32 1.442695, %v2032_v20  ;;  %v4197_v22 = vpop.eup %3698  ;;  %v1633_v20 = vpack.c.bf16 %v1605_v14, %v1605_v14 }
 0x28d   : > { %v2057_v23 = vsel %vm1634_vm3, %v4197_v22, 0.0 }
 0x28e   : > { %3704 = vpow2.f32 %v2045_v21  ;;  %2058 = vadd.xlane.f32.xlu0 %v2057_v23  ;;  %v2426_v23 = vsel %vm2102_vm4, %v1633_v20, 0 }
 0x290   : > { %v4201_v24 = vpop.eup %3700 }
 0x291   : > { %v2060_v25 = vsel %vm1634_vm3, %v4201_v24, 0.0 }
 0x292   : > { %2061 = vadd.xlane.f32.xlu1 %v2060_v25  ;;  %v2023_v26 = vpop.xlane.xlu0 %2022 }
 0x293   : > { %v2033_v27 = vsub.f32 %v1951_v50, %v2023_v26 }
 0x295   : > { %v2047_v29 = vmul.f32 1.442695, %v2033_v27 }
 0x296   : > { %v2026_v30 = vpop.xlane.xlu1 %2025 }
 0x297   : > { %v4205_v28 = vpop.eup %3702  ;;  %3706 = vpow2.f32 %v2047_v29  ;;  %v2034_v32 = vsub.f32 %v1997_v54, %v2026_v30  ;;  %v2196_v54 = vsel %vm2102_vm4, %v1628_v47, 0  ;;  %v2469_v30 = vld [vmem:[%s3973_s17] sm:$0xf] }
 0x298   : > { %v2063_v31 = vsel %vm1634_vm3, %v4205_v28, 0.0 }
 0x299   : > { %2064 = vadd.xlane.f32.xlu0 %v2063_v31  ;;  %v2049_v34 = vmul.f32 1.442695, %v2034_v32  ;;  %v2524_v31 = vsel %vm2102_vm4, %v2469_v30, 0  ;;  %v3280_v32 = vld [vmem:[%s3973_s17 + $0x4] sm:$0xf] }
 0x29b   : > { %v4209_v33 = vpop.eup %3704  ;;  %3708 = vpow2.f32 %v2049_v34 }
 0x29c   : > { %v2066_v35 = vsel %vm1634_vm3, %v4209_v33, 0.0 }
 0x29d   : > { %2067 = vadd.xlane.f32.xlu1 %v2066_v35 }
 0x2a4   : > { %v4213_v36 = vpop.eup %3706 }
 0x2a5   : > { %v2069_v38 = vsel %vm1634_vm3, %v4213_v36, 0.0 }
 0x2a6   : > { %2070 = vadd.xlane.f32.xlu0 %v2069_v38 }
 0x2a8   : > { %v4217_v39 = vpop.eup %3708 }
 0x2a9   : > { %v2072_v40 = vsel %vm1634_vm3, %v4217_v39, 0.0 }
 0x2aa   : > { %2073 = vadd.xlane.f32.xlu1 %v2072_v40 }
 0x30a   : > { %v2053_v41 = vpop.xlane.xlu0 %2052 }
 0x30b   : > { %3710 = vrcp.f32 %v2053_v41 }
 0x30e   : > { %v2056_v42 = vpop.xlane.xlu1 %2055 }
 0x30f   : > { %3712 = vrcp.f32 %v2056_v42 }
 0x317   : > { %v2059_v50 = vpop.xlane.xlu0 %2058 }
 0x318   : > { %v3711_v46 = vpop.eup %3710  ;;  %3714 = vrcp.f32 %v2059_v50  ;;  %v3283_v50 = vld [vmem:[%s3973_s17 + $0x8] sm:$0xf] }
 0x319   : > { %v2083_v51 = vmul.f32 %v3711_v46, %v3695_v7 }
 0x31b   : > { %v2091_v52 = vpack.c.bf16 %v2083_v51, %v2083_v51  ;;  %v2062_v57 = vpop.xlane.xlu1 %2061 }
 0x31c   : > { %v3713_v53 = vpop.eup %3712  ;;  %3716 = vrcp.f32 %v2062_v57 }
 0x31d   : > { %3543 = vmatmul.mubr.msk.bf16.vlgmr.msra.gmra.mxu0 %vm1634_vm3, %v2091_v52  ;;  %v2084_v58 = vmul.f32 %v3713_v53, %v3697_v12  ;;  %v2334_v12 = vsel %vm2102_vm4, %v1631_v10, 0 }
 0x31e   : > { %3553 = vmatpush3.bf16.msra.mxu0 %v2196_v54  ;;  %3554 = vmatprep.mubr.msk.bf16.mxu0 %vm3806_vm1, %v3805_v3  ;;  %v2574_v54 = vsel %vm2102_vm4, %v3283_v50, 0 }
 0x31f   : > { %v2092_v0 = vpack.c.bf16 %v2084_v58, %v2084_v58  ;;  %3564 = vmatprep.subr.bf16.mxu0 %v3805_v3 }
 0x321   : > { %3549 = vmatmul.mubr.msk.bf16.vlgmr.msra.gmra.mxu1 %vm1634_vm3, %v2092_v0 }
 0x322   : > { %3559 = vmatpush3.bf16.msra.mxu1 %v2242_v9  ;;  %v2065_v60 = vpop.xlane.xlu0 %2064  ;;  %3560 = vmatprep.mubr.msk.bf16.mxu1 %vm3806_vm1, %v3805_v3 }
 0x323   : > { %3718 = vrcp.f32 %v2065_v60  ;;  %3570 = vmatprep.subr.bf16.mxu1 %v3805_v3 }
 0x325   : > { %v3715_v63 = vpop.eup %3714 }
 0x326   : > { %v2068_v62 = vpop.xlane.xlu1 %2067  ;;  %v2085_v4 = vmul.f32 %v3715_v63, %v4197_v22 }
 0x327   : > { %3720 = vrcp.f32 %v2068_v62 }
 0x328   : > { %v2093_v6 = vpack.c.bf16 %v2085_v4, %v2085_v4 }
 0x329   : > { %v3717_v7 = vpop.eup %3716 }
 0x32a   : > { %3555 = vmatmul.mubr.msk.bf16.vlgmr.msra.gmra.mxu0 %vm1634_vm3, %v2093_v6  ;;  %v2086_v48 = vmul.f32 %v3717_v7, %v4201_v24 }
 0x32b   : > { %3565 = vmatpush3.bf16.msra.mxu0 %v2288_v8  ;;  %3566 = vmatprep.mubr.msk.bf16.mxu0 %vm3806_vm1, %v3805_v3 }
 0x32c   : > { %v2094_v11 = vpack.c.bf16 %v2086_v48, %v2086_v48  ;;  %3576 = vmatprep.subr.bf16.mxu0 %v3805_v3 }
 0x32e   : > { %3561 = vmatmul.mubr.msk.bf16.vlgmr.msra.gmra.mxu1 %vm1634_vm3, %v2094_v11 }
 0x32f   : > { %3571 = vmatpush3.bf16.msra.mxu1 %v2334_v12  ;;  %v2071_v16 = vpop.xlane.xlu0 %2070  ;;  %3572 = vmatprep.mubr.msk.bf16.mxu1 %vm3806_vm1, %v3805_v3 }
 0x330   : > { %v3719_v43 = vpop.eup %3718  ;;  %3722 = vrcp.f32 %v2071_v16  ;;  %3582 = vmatprep.subr.bf16.mxu1 %v3805_v3 }
 0x331   : > { %v2087_v17 = vmul.f32 %v3719_v43, %v4205_v28 }
 0x333   : > { %v2095_v13 = vpack.c.bf16 %v2087_v17, %v2087_v17  ;;  %v2074_v21 = vpop.xlane.xlu1 %2073 }
 0x334   : > { %v3721_v18 = vpop.eup %3720  ;;  %3724 = vrcp.f32 %v2074_v21 }
 0x335   : > { %3567 = vmatmul.mubr.msk.bf16.vlgmr.msra.gmra.mxu0 %vm1634_vm3, %v2095_v13  ;;  %v2088_v15 = vmul.f32 %v3721_v18, %v4209_v33  ;;  %v2477_v33 = vsel %vm2102_vm4, %v3280_v32, 0 }
 0x336   : > { %3577 = vmatpush3.bf16.msra.mxu0 %v2380_v19  ;;  %3578 = vmatprep.mubr.msk.bf16.mxu0 %vm3806_vm1, %v3805_v3 }
 0x337   : > { %v2096_v22 = vpack.c.bf16 %v2088_v15, %v2088_v15  ;;  %3588 = vmatprep.subr.bf16.mxu0 %v3805_v3 }
 0x339   : > { %3573 = vmatmul.mubr.msk.bf16.vlgmr.msra.gmra.mxu1 %vm1634_vm3, %v2096_v22 }
 0x33a   : > { %3583 = vmatpush3.bf16.msra.mxu1 %v2426_v23  ;;  %3584 = vmatprep.mubr.msk.bf16.mxu1 %vm3806_vm1, %v3805_v3 }
 0x33b   : > { %3594 = vmatprep.subr.bf16.mxu1 %v3805_v3 }
 0x33d   : > { %v3723_v24 = vpop.eup %3722 }
 0x33e   : > { %v2089_v25 = vmul.f32 %v3723_v24, %v4213_v36  ;;  %v3285_v36 = vld [vmem:[%s3973_s17 + $0xc] sm:$0xf] }
 0x33f   : > { %v2626_v41 = vsel %vm2102_vm4, %v3285_v36, 0 }
 0x340   : > { %v2097_v26 = vpack.c.bf16 %v2089_v25, %v2089_v25 }
 0x341   : > { %v3725_v27 = vpop.eup %3724 }
 0x342   : > { %3579 = vmatmul.mubr.msk.bf16.vlgmr.msra.gmra.mxu0 %vm1634_vm3, %v2097_v26  ;;  %v2090_v28 = vmul.f32 %v3725_v27, %v4217_v39  ;;  %v3287_v26 = vld [vmem:[%s4419_s27] ss:$0 sm:$0xff] }
 0x343   : > { %3590 = vmatprep.mubr.msk.bf16.mxu0 %vm3806_vm1, %v3805_v3  ;;  %3589 = vmatpush3.bf16.msra.mxu0 %v2477_v33 }
 0x344   : > { %v2098_v29 = vpack.c.bf16 %v2090_v28, %v2090_v28  ;;  %3600 = vmatprep.subr.bf16.mxu0 %v3805_v3 }
 0x346   : > { %3585 = vmatmul.mubr.msk.bf16.vlgmr.msra.gmra.mxu1 %vm1634_vm3, %v2098_v29 }
 0x347   : > { %3596 = vmatprep.mubr.msk.bf16.mxu1 %vm3806_vm1, %v3805_v3  ;;  %3595 = vmatpush3.bf16.msra.mxu1 %v2524_v31 }
 0x348   : > { %3606 = vmatprep.subr.bf16.mxu1 %v3805_v3 }
 0x3dd   : > { %v2140_v34 = vpop.f32.mrf.mxu0 }
 0x3df   : > { %v3544_v35 = vpop.f32.mrf.mxu0 }
 0x3e1   : > { %v2143_v38 = vpop.f32.mrf.mxu0  ;;  %v2186_v39 = vpop.f32.mrf.mxu1 }
 0x3e2   : > { %v2468_v40 = vpack.c.bf16 %v2186_v39, %v2140_v34  ;;  %v3734_v34 = vld [vmem:[#allocation5] sm:$0xff] }
 0x3e3   : > { %v3545_v42 = vpop.f32.mrf.mxu0  ;;  %v3550_v44 = vpop.f32.mrf.mxu1 }
 0x3e4   : > { %3597 = vmatmul.mubr.msk.bf16.vlgmr.msra.gmra.mxu1 %vm1634_vm3, %v2468_v40  ;;  %v3735_v40 = vld [vmem:[#allocation5 + $0x8] sm:$0xff] }
 0x3e5   : > { %v2189_v45 = vpop.f32.mrf.mxu1  ;;  %3607 = vmatpush3.bf16.msra.mxu1 %v2626_v41  ;;  %3608 = vmatprep.mubr.msk.bf16.mxu1 %vm3806_vm1, %v3805_v3 }
 0x3e6   : > { %3620 = vmatprep.subr.bf16.mxu1 %v3805_v3 }
 0x3e7   : > { %v3551_v46 = vpop.f32.mrf.mxu1 }
 0x3ea   : > { %v2232_v47 = vpop.f32.mrf.mxu0 }
 0x3ec   : > { %v3556_v49 = vpop.f32.mrf.mxu0 }
 0x3ee   : > { %v2235_v51 = vpop.f32.mrf.mxu0  ;;  %v2278_v52 = vpop.f32.mrf.mxu1 }
 0x3ef   : > { %v2470_v53 = vpack.c.bf16 %v2278_v52, %v2232_v47 }
 0x3f0   : > { %v3557_v56 = vpop.f32.mrf.mxu0  ;;  %v3562_v57 = vpop.f32.mrf.mxu1 }
 0x3f1   : > { %3591 = vmatmul.mubr.msk.bf16.vlgmr.msra.gmra.mxu0 %vm1634_vm3, %v2470_v53  ;;  %v3688_v56 = vld [vmem:[%s3986_s6 + $0x8] sm:$0xff]   ;;  %v3689_v57 = vld [vmem:[%s3986_s6] sm:$0xff]  }
 0x3f2   : > { %v2281_v58 = vpop.f32.mrf.mxu1  ;;  %3601 = vmatpush3.bf16.msra.mxu0 %v2574_v54  ;;  %3602 = vmatprep.mubr.msk.bf16.mxu0 %vm3806_vm1, %v3805_v3 }
 0x3f3   : > { %3612 = vmatprep.subr.bf16.mxu0 %v3805_v3  ;;  %v3690_v58 = vld [vmem:[%s3996_s8 + $0x18] sm:$0xff]  }
 0x3f4   : > { %v3563_v9 = vpop.f32.mrf.mxu1 }
 0x3f5   : > { %v2324_v0 = vpop.f32.mrf.mxu0 }
 0x3f7   : > { %v3568_v59 = vpop.f32.mrf.mxu0 }
 0x3f9   : > { %v2327_v60 = vpop.f32.mrf.mxu0  ;;  %v2370_v61 = vpop.f32.mrf.mxu1 }
 0x3fa   : > { %v2567_v62 = vpack.c.bf16 %v2370_v61, %v2324_v0 }
 0x3fb   : > { %v3569_v63 = vpop.f32.mrf.mxu0  ;;  %v3574_v1 = vpop.f32.mrf.mxu1 }
 0x3fc   : > { %3603 = vmatmul.mubr.msk.bf16.vlgmr.msra.gmra.mxu0 %vm1634_vm3, %v2567_v62 }
 0x3fd   : > { %v2373_v2 = vpop.f32.mrf.mxu1  ;;  %3616 = vmatprep.mubr.msk.bf16.mxu0 %vm3806_vm1, %v3805_v3  ;;  %3613 = vmatpush3.bf16.msra.mxu0 %v3688_v56 }
 0x3fe   : > { %3614 = vmatprep.subr.bf16.mxu0 %v3805_v3  ;;  %v3288_v2 = vld [vmem:[%s4420_s19] ss:$0 sm:$0xff] }
 0x3ff   : > { %v3575_v4 = vpop.f32.mrf.mxu1 }
 0x401   : > { %3615 = vmatpush3.bf16.msra.mxu0 %v3689_v57 }
 0x402   : > { %v2416_v5 = vpop.f32.mrf.mxu0 }
 0x404   : > { %v3580_v6 = vpop.f32.mrf.mxu0 }
 0x406   : > { %v2419_v7 = vpop.f32.mrf.mxu0  ;;  %v2462_v8 = vpop.f32.mrf.mxu1 }
 0x407   : > { %v2619_v10 = vpack.c.bf16 %v2462_v8, %v2416_v5  ;;  %v3289_v7 = vld [vmem:[%s4421_s4] ss:$0 sm:$0xff] }
 0x408   : > { %v3581_v48 = vpop.f32.mrf.mxu0  ;;  %v3586_v37 = vpop.f32.mrf.mxu1 }
 0x409   : > { %3609 = vmatmul.mubr.msk.bf16.vlgmr.msra.gmra.mxu1 %vm1634_vm3, %v2619_v10 }
 0x40a   : > { %v2465_v11 = vpop.f32.mrf.mxu1  ;;  %3628 = vmatprep.mubr.msk.bf16.mxu1 %vm3806_vm1, %v3805_v3  ;;  %3621 = vmatpush3.bf16.msra.mxu1 %v3690_v58 }
 0x40b   : > { %3622 = vmatprep.subr.bf16.mxu1 %v3805_v3  ;;  %v3691_v11 = vld [vmem:[%s3996_s8 + $0x10] sm:$0xff]  }
 0x40c   : > { %v3587_v43 = vpop.f32.mrf.mxu1 }
 0x40d   : > { %v3692_v43 = vld [vmem:[%s3996_s8 + $0x8] sm:$0xff]  }
 0x40e   : > { %3623 = vmatpush3.bf16.msra.mxu1 %v3691_v11 }
 0x40f   : > { %3624 = vmatprep.subr.bf16.mxu1 %v3805_v3 }
 0x412   : > { %3625 = vmatpush3.bf16.msra.mxu1 %v3692_v43 }
 0x413   : > { %3626 = vmatprep.subr.bf16.mxu1 %v3805_v3  ;;  %v3294_v3 = vld [vmem:[%s792_s5] ss:$0 sm:$0xff] }
 0x4a4   : > { %v2560_v12 = vpop.f32.mrf.mxu1 }
 0x4a6   : > { %v3598_v55 = vpop.f32.mrf.mxu1 }
 0x4a7   : > { %v3290_v55 = vld [vmem:[%s784_s21] ss:$0 sm:$0xff] }
 0x4a8   : > { %v2563_v14 = vpop.f32.mrf.mxu1 }
 0x4aa   : > { %v3599_v16 = vpop.f32.mrf.mxu1 }
 0x4b1   : > { %v2513_v17 = vpop.f32.mrf.mxu0 }
 0x4b2   : > { %v2561_v23 = vadd.f32 %v2560_v12, %v2513_v17  ;;  %v3693_v12 = vld [vmem:[%s3996_s8] sm:$0xff]   ;;  %s4422_s8 = sld [smem:[#allocation9_spill]] }
 0x4b3   : > { %v3592_v13 = vpop.f32.mrf.mxu0  ;;  %3627 = vmatpush3.bf16.msra.mxu1 %v3693_v12 }
 0x4b5   : > { %v2516_v18 = vpop.f32.mrf.mxu0 }
 0x4b6   : > { %v2564_v27 = vadd.f32 %v2563_v14, %v2516_v18 }
 0x4b7   : > { %v3593_v19 = vpop.f32.mrf.mxu0 }
 0x4b8   : > { %p3646_p2 = scmp.eq.s32.totalorder %s4422_s8, 1 }
 0x4bc   : > { %v2610_v20 = vpop.f32.mrf.mxu0 }
 0x4bd   : > { %v2617_v24 = vadd.f32 %v2610_v20, %v2561_v23 }
 0x4be   : > { %v3604_v21 = vpop.f32.mrf.mxu0 }
 0x4c0   : > { %v2613_v15 = vpop.f32.mrf.mxu0 }
 0x4c1   : > { %v2618_v30 = vadd.f32 %v2613_v15, %v2564_v27 }
 0x4c2   : > { %v3605_v22 = vpop.f32.mrf.mxu0 }
 0x4c9   : > { %v2662_v25 = vpop.f32.mrf.mxu1 }
 0x4ca   : > { %v2669_v28 = vadd.f32 %v2662_v25, %v2617_v24 }
 0x4cb   : > { %v3610_v29 = vpop.f32.mrf.mxu1 }
 0x4cc   : > { %v2678_v31 = vadd.f32 %v3287_v26, %v2669_v28 }
 0x4cd   : > { %v2665_v32 = vpop.f32.mrf.mxu1 }
 0x4ce   : > { %v2670_v33 = vadd.f32 %v2665_v32, %v2618_v30  ;;  %v2680_v35 = vadd.f32 %v3734_v34, %v2678_v31 }
 0x4cf   : > { %v3611_v36 = vpop.f32.mrf.mxu1 }
 0x4d0   : > { %v2679_v38 = vadd.f32 %v3287_v26, %v2670_v33  ;;  %v2684_v39 = vsel %vm835_vm2, %v2680_v35, 0.0 }
 0x4d1   : > { %2685 = vadd.xlane.f32.xlu0 %v2684_v39 }
 0x4d2   : > { %v2681_v41 = vadd.f32 %v3735_v40, %v2679_v38 }
 0x4d4   : > { %v2687_v42 = vsel %vm835_vm2, %v2681_v41, 0.0 }
 0x4d5   : > { %2688 = vadd.xlane.f32.xlu1 %v2687_v42 }
 0x55a   : > { %v2686_v44 = vpop.xlane.xlu0 %2685 }
 0x55b   : > { %v2691_v45 = vmul.f32 0.03125, %v2686_v44 }
 0x55d   : > { %v2693_v46 = vsub.f32 %v2680_v35, %v2691_v45 }
 0x55e   : > { %v2689_v47 = vpop.xlane.xlu1 %2688 }
 0x55f   : > { %v2692_v49 = vmul.f32 0.03125, %v2689_v47  ;;  %v2695_v50 = vmul.f32 %v2693_v46, %v2693_v46 }
 0x561   : > { %v2694_v51 = vsub.f32 %v2681_v41, %v2692_v49  ;;  %v2697_v52 = vsel %vm835_vm2, %v2695_v50, 0.0 }
 0x562   : > { %2698 = vadd.xlane.f32.xlu0 %v2697_v52  ;;  %v3300_v52 = vld [vmem:[%s795_s22] ss:$0 sm:$0xff]  ;;  %s3762_s22 = scalar_lea.vmem %s2937_s2, 256 }
 0x563   : > { %v2696_v53 = vmul.f32 %v2694_v51, %v2694_v51  ;;  %p3763_p3 = scmp.ne.s32.totalorder %s2937_s2, %s3762_s22  ;;  %p3770_p7 = scmp.lt.s32.totalorder %s3762_s22, %s3762_s22 }
 0x565   : > { %v2700_v54 = vsel %vm835_vm2, %v2696_v53, 0.0  ;;  %p3764_p4 = pnand %p3763_p3, %p3646_p2  ;;  %p3771_p8 = por %p3770_p7, %p3769_p6 }
 0x566   : > { %2701 = vadd.xlane.f32.xlu1 %v2700_v54  ;;  %v3301_v54 = vld [vmem:[%s798_s23] ss:$0 sm:$0xff] }
 0x567   : > { %p3765_p5 = pneg %p3764_p4 }
 0x569   : > { %p3772_p9 = pnand %p3771_p8, %p3765_p5 }
 0x5eb   : > { %v2699_v0 = vpop.xlane.xlu0 %2698 }
 0x5ec   : > { %v2703_v9 = vmul.f32 0.03125, %v2699_v0 }
 0x5ee   : > { %v2705_v59 = vadd.f32 1e-05, %v2703_v9 }
 0x5ef   : > { %v2702_v60 = vpop.xlane.xlu1 %2701 }
 0x5f0   : > { %3726 = vrsqrt.f32 %v2705_v59  ;;  %v2704_v61 = vmul.f32 0.03125, %v2702_v60 }
 0x5f2   : > { %v2706_v62 = vadd.f32 1e-05, %v2704_v61 }
 0x5f4   : > { %3728 = vrsqrt.f32 %v2706_v62 }
 0x5fd   : > { %v3727_v63 = vpop.eup %3726 }
 0x5fe   : > { %v2709_v1 = vmul.f32 %v3727_v63, %v2693_v46 }
 0x600   : > { %v2717_v6 = vmul.f32 %v3288_v2, %v2709_v1 }
 0x601   : > { %v3729_v4 = vpop.eup %3728 }
 0x602   : > { %v2710_v5 = vmul.f32 %v3729_v4, %v2694_v51  ;;  %v2725_v10 = vadd.f32 %v3289_v7, %v2717_v6 }
 0x604   : > { %v2718_v8 = vmul.f32 %v3288_v2, %v2710_v5 }
 0x606   : > { %v2726_v48 = vadd.f32 %v3289_v7, %v2718_v8 }
 0x608   : > { %v2727_v37 = vpack.c.bf16 %v2726_v48, %v2725_v10 }
 0x60a   : > { %3617 = vmatmul.mubr.msk.bf16.vlgmr.msra.gmra.mxu0 %vm835_vm2, %v2727_v37 }
 0x6ca   : > { %v2788_v14 = vpop.f32.mrf.mxu0 }
 0x6cb   : > { %v2789_v17 = vadd.f32 %v3290_v55, %v2788_v14 }
 0x6cc   : > { %v3618_v16 = vpop.f32.mrf.mxu0 }
 0x6cd   : > { %v2795_v20 = vmax.f32 %v2789_v17, 0.0 }
 0x6ce   : > { %v2791_v13 = vpop.f32.mrf.mxu0 }
 0x6cf   : > { %v2792_v18 = vadd.f32 %v3290_v55, %v2791_v13 }
 0x6d0   : > { %v3619_v19 = vpop.f32.mrf.mxu0 }
 0x6d1   : > { %v2796_v21 = vmax.f32 %v2792_v18, 0.0 }
 0x6d3   : > { %v2797_v15 = vpack.c.bf16 %v2796_v21, %v2795_v20 }
 0x6d5   : > { %3629 = vmatmul.mubr.msk.bf16.vlgmr.msra.gmra.mxu1 %vm2837_vm5, %v2797_v15 }
 0x795   : > { %v2875_v22 = vpop.f32.mrf.mxu1 }
 0x796   : > { %v2876_v23 = vadd.f32 %v3294_v3, %v2875_v22 }
 0x797   : > { %v3630_v24 = vpop.f32.mrf.mxu1 }
 0x798   : > { %v2882_v25 = vadd.f32 %v2876_v23, %v2725_v10 }
 0x799   : > { %v2878_v26 = vpop.f32.mrf.mxu1 }
 0x79a   : > { %v2879_v27 = vadd.f32 %v3294_v3, %v2878_v26  ;;  %v2886_v28 = vsel %vm835_vm2, %v2882_v25, 0.0 }
 0x79b   : > { %2887 = vadd.xlane.f32.xlu0 %v2886_v28  ;;  %v3631_v29 = vpop.f32.mrf.mxu1 }
 0x79c   : > { %v2883_v30 = vadd.f32 %v2879_v27, %v2726_v48 }
 0x79e   : > { %v2889_v31 = vsel %vm835_vm2, %v2883_v30, 0.0 }
 0x79f   : > { %2890 = vadd.xlane.f32.xlu1 %v2889_v31 }
 0x824   : > { %v2888_v32 = vpop.xlane.xlu0 %2887 }
 0x825   : > { %v2892_v33 = vmul.f32 0.03125, %v2888_v32 }
 0x827   : > { %v2894_v34 = vsub.f32 %v2882_v25, %v2892_v33 }
 0x828   : > { %v2891_v35 = vpop.xlane.xlu1 %2890 }
 0x829   : > { %v2893_v36 = vmul.f32 0.03125, %v2891_v35  ;;  %v2896_v38 = vmul.f32 %v2894_v34, %v2894_v34 }
 0x82b   : > { %v2895_v39 = vsub.f32 %v2883_v30, %v2893_v36  ;;  %v2898_v40 = vsel %vm835_vm2, %v2896_v38, 0.0 }
 0x82c   : > { %2899 = vadd.xlane.f32.xlu0 %v2898_v40 }
 0x82d   : > { %v2897_v41 = vmul.f32 %v2895_v39, %v2895_v39 }
 0x82f   : > { %v2901_v42 = vsel %vm835_vm2, %v2897_v41, 0.0 }
 0x830   : > { %2902 = vadd.xlane.f32.xlu1 %v2901_v42 }
 0x8b5   : > { %v2900_v44 = vpop.xlane.xlu0 %2899 }
 0x8b6   : > { %v2904_v45 = vmul.f32 0.03125, %v2900_v44 }
 0x8b8   : > { %v2906_v46 = vadd.f32 1e-05, %v2904_v45 }
 0x8b9   : > { %v2903_v47 = vpop.xlane.xlu1 %2902 }
 0x8ba   : > { %3730 = vrsqrt.f32 %v2906_v46  ;;  %v2905_v49 = vmul.f32 0.03125, %v2903_v47 }
 0x8bc   : > { %v2907_v50 = vadd.f32 1e-05, %v2905_v49 }
 0x8be   : > { %3732 = vrsqrt.f32 %v2907_v50 }
 0x8c7   : > { %v3731_v51 = vpop.eup %3730 }
 0x8c8   : > { %v2910_v53 = vmul.f32 %v3731_v51, %v2894_v34 }
 0x8ca   : > { %v2918_v56 = vmul.f32 %v3300_v52, %v2910_v53 }
 0x8cb   : > { %v3733_v57 = vpop.eup %3732 }
 0x8cc   : > { %v2911_v58 = vmul.f32 %v3733_v57, %v2895_v39  ;;  %v2926_v0 = vadd.f32 %v3301_v54, %v2918_v56 }
 0x8ce   : > { %v2919_v9 = vmul.f32 %v3300_v52, %v2911_v58  ;;  %2928 = vst.msk [vmem:[#allocation5] sm:$0xff] %vm835_vm2, %v2926_v0 }
 0x8d0   : > { %v2927_v59 = vadd.f32 %v3301_v54, %v2919_v9 }
 0x8d2   : > { %2929 = vst.msk [vmem:[#allocation5 + $0x8] sm:$0xff] %vm835_vm2, %v2927_v59 }
 0x8d3   : > { %3775 = shalt.err (!%p3772_p9)
}
 0x8d4   : > { %s3808_s20 = smov 128   ;;  %s3809_s23 = smov 8  }
 0x8d5   : > { %s4423_s27 = sld [smem:[#allocation21_spill]] }
 0x8db   : > { %3637 = dma.vmem_to_hbm [thread:$0]  (%p3646_p2), %s2937_s2, 256, %s4423_s27, [#allocation4], %s3808_s20, %s3808_s20, %s3809_s23  }
 0x8dc   : > { %3795 = dma.done.wait (%p3646_p2), [#allocation4], 256  }
 0x8dd   : > { %3797 = vsyncadd (%p3646_p2), [#allocation4], 4294967040 }
 0x8de PF: > { %s4424_s6 = sld [smem:[#allocation8_spill]] }
 0x8e4   : > { %s29_s24 = sadd.s32 1, %s4424_s6  }
 0x8e5   : > { %p26_p10 = scmp.ge.s32.totalorder %s29_s24, 4  }
 0x8e7   :  { %28 = sbr.rel (!%p26_p10) target bundleno = 13 (0xd), region = 190 }
 0x8ec   :  { %2952 = vsyncpa [#allocation3], 1 }
 0x8ed   :  { %2954 = vsyncpa [#allocation3 + $0x1], 1 }
 0x8ee   :  { %2955 = vsyncpa [#allocation4], 1 }
 0x8ef   :  { %2957 = vsyncpa [#allocation4 + $0x1], 1 }

</bundles_post_ra>
